<compile_context>
chip_gen: v7x
topology: tpu7x:2x2x1
jax: 0.10.0
libtpu: 0.0.40
codegen_flags: <defaults>
</compile_context>

<pallas_src>
import math

import jax
import jax.numpy as jnp
from jax.experimental import pallas as pl
from jax.experimental.pallas import tpu as pltpu


# ------------------------------ fusion kernel --------------------------------

def _fusion_kernel(x_ref, w1_ref, b1_ref, w2_ref, b2_ref, w3_ref, b3_ref,
                   w4_ref, b4_ref, w5_ref, b5_ref, ws_ref, bs_ref, out_ref):
    """5-layer ReLU fusion MLP + scoring linear for one tile of rows.

    x_ref   : [tile_rows, Din]   concatenated (vision, language) rows
    w*/b*   : fusion Linear weights, stored [D_in, D_out] / [1, D_out]
    ws_ref  : [1, FF] scoring weight stored as a row -> VPU multiply +
              cross-lane reduce (no 1-lane MXU matmul, no lane-sparse store)
    bs_ref  : [1, 1]  scoring bias
    out_ref : [1, tile_rows] scores, rows-in-lanes (lane-dense store)
    """
    h = jnp.dot(x_ref[...], w1_ref[...], preferred_element_type=jnp.float32) + b1_ref[...]
    h = jnp.maximum(h, 0.0)
    h = jnp.dot(h, w2_ref[...], preferred_element_type=jnp.float32) + b2_ref[...]
    h = jnp.maximum(h, 0.0)
    h = jnp.dot(h, w3_ref[...], preferred_element_type=jnp.float32) + b3_ref[...]
    h = jnp.maximum(h, 0.0)
    h = jnp.dot(h, w4_ref[...], preferred_element_type=jnp.float32) + b4_ref[...]
    h = jnp.maximum(h, 0.0)
    h = jnp.dot(h, w5_ref[...], preferred_element_type=jnp.float32) + b5_ref[...]
    # scoring_mlp: Linear(FF, 1) applied as elementwise mul + reduce -> [tile_rows]
    score = jnp.sum(h * ws_ref[...], axis=-1) + bs_ref[0, 0]
    out_ref[0, :] = score


# ----------------------------- pallas_call wrapper ----------------------------

_FUS_ORDER = ("w1", "b1", "w2", "b2", "w3", "b3", "w4", "b4", "w5", "b5", "ws", "bs")


def _full_spec(a):
    zeros = (0,) * a.ndim
    return pl.BlockSpec(a.shape, lambda i, zeros=zeros: zeros)


def run_fusion(concat_feat, fus_params, tile_rows=128):
    """Row-tiled fused MLP + scoring over [R, Din] rows -> [R] scores."""
    R, Din = concat_feat.shape
    n_tiles = pl.cdiv(R, tile_rows)
    Rp = n_tiles * tile_rows
    x = jnp.pad(concat_feat, ((0, Rp - R), (0, 0)))   # padded rows sliced off below
    weights = [fus_params[k] for k in _FUS_ORDER]
    out = pl.pallas_call(
        _fusion_kernel,
        out_shape=jax.ShapeDtypeStruct((1, Rp), jnp.float32),
        grid=(n_tiles,),
        in_specs=[pl.BlockSpec((tile_rows, Din), lambda i: (i, 0))]
                 + [_full_spec(w) for w in weights],
        out_specs=pl.BlockSpec((1, tile_rows), lambda i: (0, i)),
        compiler_params=pltpu.CompilerParams(
            dimension_semantics=("parallel",)),
    )(x, *weights)
    return out.reshape(Rp)[:R]


# ----------------------------- parameters ------------------------------------

def _linear_params(key, fan_in, fan_out):
    # torch.nn.Linear default init (kaiming_uniform(a=sqrt(5)) + uniform bias),
    # stored feature-last: y = x @ W + b with W: [D_in, D_out].
    kw, kb = jax.random.split(key)
    bound = 1.0 / math.sqrt(fan_in)
    w = jax.random.uniform(kw, (fan_in, fan_out), jnp.float32, -bound, bound)
    b = jax.random.uniform(kb, (1, fan_out), jnp.float32, -bound, bound)
    return w, b


def init_params(key, lm_feat_dim_in, vision_feat_dim_in, dim_feedforward):
    din, ff = vision_feat_dim_in + lm_feat_dim_in, dim_feedforward
    keys = jax.random.split(key, 6)
    fus = {}
    for idx, (fi, fo) in enumerate(
            [(din, ff), (ff, ff), (ff, ff), (ff, ff), (ff, ff)], 1):
        w, b = _linear_params(keys[idx - 1], fi, fo)
        fus[f"w{idx}"], fus[f"b{idx}"] = w, b
    ws, bs = _linear_params(keys[5], ff, 1)          # scoring_mlp: Linear(ff, 1)
    fus["ws"] = ws.reshape(1, ff)                    # row layout for the VPU reduce
    fus["bs"] = bs                                   # [1, 1]
    return {"fusion": fus}


# ----------------------------- forward (glue + kernel) ------------------------

def bbox_head_forward(params, grd_token_hidden_states_list, vision_features):
    """JAX/Pallas equivalent of the PyTorch module's forward."""
    B, N, _ = vision_features.shape
    # TODO(synk): ragged per-sample grd-token lists are handled as host-side
    # Python loops (row stacking); Pallas sees one dense [T*N, Din] batch.
    rows = []
    for b, grd in enumerate(grd_token_hidden_states_list):
        vision_feat = vision_features[b]                               # [N, 7]
        for i in range(grd.shape[0]):
            lang_rep = jnp.broadcast_to(grd[i][None, :], (N, grd.shape[1]))
            rows.append(jnp.concatenate([vision_feat, lang_rep], axis=-1))
    concat_feat = jnp.concatenate(rows, axis=0)                        # [T*N, 7 + D_lm]
    scores = run_fusion(concat_feat, params["fusion"])                 # [T*N]
    return scores.reshape(len(rows), N)                                # [T, N]


def _reference_forward(params, grd_token_hidden_states_list, vision_features):
    f = params["fusion"]
    outs = []
    for b, grd in enumerate(grd_token_hidden_states_list):
        vf = vision_features[b]
        N = vf.shape[0]
        for i in range(grd.shape[0]):
            lang = jnp.broadcast_to(grd[i][None, :], (N, grd.shape[1]))
            x = jnp.concatenate([vf, lang], axis=-1)
            h = jnp.maximum(x @ f["w1"] + f["b1"], 0.0)
            h = jnp.maximum(h @ f["w2"] + f["b2"], 0.0)
            h = jnp.maximum(h @ f["w3"] + f["b3"], 0.0)
            h = jnp.maximum(h @ f["w4"] + f["b4"], 0.0)
            h = h @ f["w5"] + f["b5"]
            outs.append(jnp.sum(h * f["ws"], axis=-1) + f["bs"][0, 0])
    return jnp.stack(outs, axis=0)


# ----------------------------- main -------------------------------------------

if __name__ == "__main__":
    key = jax.random.PRNGKey(0)
    k_param, k_vis, k_cls, k_g0, k_g1 = jax.random.split(key, 5)

    B, N_LATENTS, LM_DIM, VIS_DIM, FF = 2, 16, 32, 7, 256
    params = init_params(k_param, lm_feat_dim_in=LM_DIM,
                         vision_feat_dim_in=VIS_DIM, dim_feedforward=FF)

    corners = jax.random.uniform(k_vis, (B, N_LATENTS, 6), jnp.float32)
    classes = jax.random.randint(k_cls, (B, N_LATENTS, 1), 1, 265).astype(jnp.float32)
    vision_features = jnp.concatenate([corners, classes], axis=-1)     # [B, N, 7]

    grd_token_hidden_states_list = [
        jax.random.normal(k_g0, (2, LM_DIM), jnp.float32),
        jax.random.normal(k_g1, (1, LM_DIM), jnp.float32),
    ]

    out = bbox_head_forward(params, grd_token_hidden_states_list, vision_features)
    out = jax.block_until_ready(out)

    ref = _reference_forward(params, grd_token_hidden_states_list, vision_features)
    assert out.shape == (3, N_LATENTS), out.shape
    assert bool(jnp.all(jnp.isfinite(out))), "non-finite output"
    assert bool(jnp.allclose(out, ref, rtol=2e-3, atol=2e-3)), "mismatch vs reference"
    print("KERNEL_OK")
</pallas_src>

<mosaic_0001>
module attributes {stable_mosaic.version = 11 : i64} {
  func.func @_fusion_kernel(%arg0: i32, %arg1: memref<128x39xf32, #tpu.memory_space<vmem>>, %arg2: memref<39x256xf32, #tpu.memory_space<vmem>>, %arg3: memref<1x256xf32, #tpu.memory_space<vmem>>, %arg4: memref<256x256xf32, #tpu.memory_space<vmem>>, %arg5: memref<1x256xf32, #tpu.memory_space<vmem>>, %arg6: memref<256x256xf32, #tpu.memory_space<vmem>>, %arg7: memref<1x256xf32, #tpu.memory_space<vmem>>, %arg8: memref<256x256xf32, #tpu.memory_space<vmem>>, %arg9: memref<1x256xf32, #tpu.memory_space<vmem>>, %arg10: memref<256x256xf32, #tpu.memory_space<vmem>>, %arg11: memref<1x256xf32, #tpu.memory_space<vmem>>, %arg12: memref<1x256xf32, #tpu.memory_space<vmem>>, %arg13: memref<1x1xf32, #tpu.memory_space<vmem>>, %arg14: memref<1x128xf32, #tpu.memory_space<vmem>>) attributes {dimension_semantics = [#tpu.dimension_semantics<parallel>], iteration_bounds = array<i64: 1>, scalar_prefetch = 0 : i64, scratch_operands = 0 : i64, tpu.core_type = #tpu.core_type<tc>, window_params = [{transform_indices = @transform_0, window_bounds = array<i64: 128, 39>}, {pipeline_mode = #tpu.pipeline_mode<synchronous>, transform_indices = @transform_1, window_bounds = array<i64: 39, 256>}, {pipeline_mode = #tpu.pipeline_mode<synchronous>, transform_indices = @transform_2, window_bounds = array<i64: 1, 256>}, {pipeline_mode = #tpu.pipeline_mode<synchronous>, transform_indices = @transform_3, window_bounds = array<i64: 256, 256>}, {pipeline_mode = #tpu.pipeline_mode<synchronous>, transform_indices = @transform_4, window_bounds = array<i64: 1, 256>}, {pipeline_mode = #tpu.pipeline_mode<synchronous>, transform_indices = @transform_5, window_bounds = array<i64: 256, 256>}, {pipeline_mode = #tpu.pipeline_mode<synchronous>, transform_indices = @transform_6, window_bounds = array<i64: 1, 256>}, {pipeline_mode = #tpu.pipeline_mode<synchronous>, transform_indices = @transform_7, window_bounds = array<i64: 256, 256>}, {pipeline_mode = #tpu.pipeline_mode<synchronous>, transform_indices = @transform_8, window_bounds = array<i64: 1, 256>}, {pipeline_mode = #tpu.pipeline_mode<synchronous>, transform_indices = @transform_9, window_bounds = array<i64: 256, 256>}, {pipeline_mode = #tpu.pipeline_mode<synchronous>, transform_indices = @transform_10, window_bounds = array<i64: 1, 256>}, {pipeline_mode = #tpu.pipeline_mode<synchronous>, transform_indices = @transform_11, window_bounds = array<i64: 1, 256>}, {pipeline_mode = #tpu.pipeline_mode<synchronous>, transform_indices = @transform_12, window_bounds = array<i64: 1, 1>}, {transform_indices = @transform_13, window_bounds = array<i64: 1, 128>}]} {
    %c0 = arith.constant 0 : index
    %c0_0 = arith.constant 0 : index
    %0 = vector.load %arg1[%c0, %c0_0] : memref<128x39xf32, #tpu.memory_space<vmem>>, vector<128x39xf32>
    %c0_1 = arith.constant 0 : index
    %c0_2 = arith.constant 0 : index
    %1 = vector.load %arg2[%c0_1, %c0_2] : memref<39x256xf32, #tpu.memory_space<vmem>>, vector<39x256xf32>
    %cst = arith.constant dense<0.000000e+00> : vector<128x256xf32>
    %2 = tpu.matmul %0, %1, %cst {dimension_numbers = #tpu.dot_dimension_numbers<[1], [0], [0], [1], [0, 0, 1, 1], [], []>} : vector<128x39xf32>, vector<39x256xf32>, vector<128x256xf32> -> vector<128x256xf32>
    %c0_3 = arith.constant 0 : index
    %c0_4 = arith.constant 0 : index
    %3 = vector.load %arg3[%c0_3, %c0_4] : memref<1x256xf32, #tpu.memory_space<vmem>>, vector<1x256xf32>
    %4 = vector.broadcast %3 : vector<1x256xf32> to vector<128x256xf32>
    %5 = arith.addf %2, %4 : vector<128x256xf32>
    %cst_5 = arith.constant 0.000000e+00 : f32
    %6 = vector.broadcast %cst_5 : f32 to vector<128x256xf32>
    %7 = arith.maximumf %5, %6 : vector<128x256xf32>
    %c0_6 = arith.constant 0 : index
    %c0_7 = arith.constant 0 : index
    %8 = vector.load %arg4[%c0_6, %c0_7] : memref<256x256xf32, #tpu.memory_space<vmem>>, vector<256x256xf32>
    %cst_8 = arith.constant dense<0.000000e+00> : vector<128x256xf32>
    %9 = tpu.matmul %7, %8, %cst_8 {dimension_numbers = #tpu.dot_dimension_numbers<[1], [0], [0], [1], [0, 0, 1, 1], [], []>} : vector<128x256xf32>, vector<256x256xf32>, vector<128x256xf32> -> vector<128x256xf32>
    %c0_9 = arith.constant 0 : index
    %c0_10 = arith.constant 0 : index
    %10 = vector.load %arg5[%c0_9, %c0_10] : memref<1x256xf32, #tpu.memory_space<vmem>>, vector<1x256xf32>
    %11 = vector.broadcast %10 : vector<1x256xf32> to vector<128x256xf32>
    %12 = arith.addf %9, %11 : vector<128x256xf32>
    %cst_11 = arith.constant 0.000000e+00 : f32
    %13 = vector.broadcast %cst_11 : f32 to vector<128x256xf32>
    %14 = arith.maximumf %12, %13 : vector<128x256xf32>
    %c0_12 = arith.constant 0 : index
    %c0_13 = arith.constant 0 : index
    %15 = vector.load %arg6[%c0_12, %c0_13] : memref<256x256xf32, #tpu.memory_space<vmem>>, vector<256x256xf32>
    %cst_14 = arith.constant dense<0.000000e+00> : vector<128x256xf32>
    %16 = tpu.matmul %14, %15, %cst_14 {dimension_numbers = #tpu.dot_dimension_numbers<[1], [0], [0], [1], [0, 0, 1, 1], [], []>} : vector<128x256xf32>, vector<256x256xf32>, vector<128x256xf32> -> vector<128x256xf32>
    %c0_15 = arith.constant 0 : index
    %c0_16 = arith.constant 0 : index
    %17 = vector.load %arg7[%c0_15, %c0_16] : memref<1x256xf32, #tpu.memory_space<vmem>>, vector<1x256xf32>
    %18 = vector.broadcast %17 : vector<1x256xf32> to vector<128x256xf32>
    %19 = arith.addf %16, %18 : vector<128x256xf32>
    %cst_17 = arith.constant 0.000000e+00 : f32
    %20 = vector.broadcast %cst_17 : f32 to vector<128x256xf32>
    %21 = arith.maximumf %19, %20 : vector<128x256xf32>
    %c0_18 = arith.constant 0 : index
    %c0_19 = arith.constant 0 : index
    %22 = vector.load %arg8[%c0_18, %c0_19] : memref<256x256xf32, #tpu.memory_space<vmem>>, vector<256x256xf32>
    %cst_20 = arith.constant dense<0.000000e+00> : vector<128x256xf32>
    %23 = tpu.matmul %21, %22, %cst_20 {dimension_numbers = #tpu.dot_dimension_numbers<[1], [0], [0], [1], [0, 0, 1, 1], [], []>} : vector<128x256xf32>, vector<256x256xf32>, vector<128x256xf32> -> vector<128x256xf32>
    %c0_21 = arith.constant 0 : index
    %c0_22 = arith.constant 0 : index
    %24 = vector.load %arg9[%c0_21, %c0_22] : memref<1x256xf32, #tpu.memory_space<vmem>>, vector<1x256xf32>
    %25 = vector.broadcast %24 : vector<1x256xf32> to vector<128x256xf32>
    %26 = arith.addf %23, %25 : vector<128x256xf32>
    %cst_23 = arith.constant 0.000000e+00 : f32
    %27 = vector.broadcast %cst_23 : f32 to vector<128x256xf32>
    %28 = arith.maximumf %26, %27 : vector<128x256xf32>
    %c0_24 = arith.constant 0 : index
    %c0_25 = arith.constant 0 : index
    %29 = vector.load %arg10[%c0_24, %c0_25] : memref<256x256xf32, #tpu.memory_space<vmem>>, vector<256x256xf32>
    %cst_26 = arith.constant dense<0.000000e+00> : vector<128x256xf32>
    %30 = tpu.matmul %28, %29, %cst_26 {dimension_numbers = #tpu.dot_dimension_numbers<[1], [0], [0], [1], [0, 0, 1, 1], [], []>} : vector<128x256xf32>, vector<256x256xf32>, vector<128x256xf32> -> vector<128x256xf32>
    %c0_27 = arith.constant 0 : index
    %c0_28 = arith.constant 0 : index
    %31 = vector.load %arg11[%c0_27, %c0_28] : memref<1x256xf32, #tpu.memory_space<vmem>>, vector<1x256xf32>
    %32 = vector.broadcast %31 : vector<1x256xf32> to vector<128x256xf32>
    %33 = arith.addf %30, %32 : vector<128x256xf32>
    %c0_29 = arith.constant 0 : index
    %c0_30 = arith.constant 0 : index
    %34 = vector.load %arg12[%c0_29, %c0_30] : memref<1x256xf32, #tpu.memory_space<vmem>>, vector<1x256xf32>
    %35 = vector.broadcast %34 : vector<1x256xf32> to vector<128x256xf32>
    %36 = arith.mulf %33, %35 : vector<128x256xf32>
    %cst_31 = arith.constant dense<0.000000e+00> : vector<128xf32>
    %37 = vector.multi_reduction <add>, %36, %cst_31 [1] : vector<128x256xf32> to vector<128xf32>
    %c0_32 = arith.constant 0 : index
    %c0_33 = arith.constant 0 : index
    %38 = vector.load %arg13[%c0_32, %c0_33] : memref<1x1xf32, #tpu.memory_space<vmem>>, vector<1x1xf32>
    %39 = vector.extract %38[0, 0] : f32 from vector<1x1xf32>
    %40 = vector.broadcast %39 : f32 to vector<128xf32>
    %41 = arith.addf %37, %40 : vector<128xf32>
    %c0_34 = arith.constant 0 : index
    %c0_35 = arith.constant 0 : index
    %42 = vector.load %arg14[%c0_34, %c0_35] : memref<1x128xf32, #tpu.memory_space<vmem>>, vector<1x128xf32>
    %43 = vector.shape_cast %42 : vector<1x128xf32> to vector<128xf32>
    %44 = vector.shape_cast %41 : vector<128xf32> to vector<1x128xf32>
    tpu.vector_store %arg14[%c0_34, %c0_35], %44 {strides = array<i32>} : memref<1x128xf32, #tpu.memory_space<vmem>>, vector<1x128xf32>,
    return
  }
  func.func @transform_0(%arg0: i32) -> (i32, i32) {
    %c0_i32 = arith.constant 0 : i32
    %c0_i32_0 = arith.constant 0 : i32
    return %arg0, %c0_i32 : i32, i32
  }
  func.func @transform_1(%arg0: i32) -> (i32, i32) {
    %c0_i32 = arith.constant 0 : i32
    %c0_i32_0 = arith.constant 0 : i32
    %c0_i32_1 = arith.constant 0 : i32
    return %c0_i32, %c0_i32_0 : i32, i32
  }
  func.func @transform_2(%arg0: i32) -> (i32, i32) {
    %c0_i32 = arith.constant 0 : i32
    %c0_i32_0 = arith.constant 0 : i32
    %c0_i32_1 = arith.constant 0 : i32
    return %c0_i32, %c0_i32_0 : i32, i32
  }
  func.func @transform_3(%arg0: i32) -> (i32, i32) {
    %c0_i32 = arith.constant 0 : i32
    %c0_i32_0 = arith.constant 0 : i32
    %c0_i32_1 = arith.constant 0 : i32
    return %c0_i32, %c0_i32_0 : i32, i32
  }
  func.func @transform_4(%arg0: i32) -> (i32, i32) {
    %c0_i32 = arith.constant 0 : i32
    %c0_i32_0 = arith.constant 0 : i32
    %c0_i32_1 = arith.constant 0 : i32
    return %c0_i32, %c0_i32_0 : i32, i32
  }
  func.func @transform_5(%arg0: i32) -> (i32, i32) {
    %c0_i32 = arith.constant 0 : i32
    %c0_i32_0 = arith.constant 0 : i32
    %c0_i32_1 = arith.constant 0 : i32
    return %c0_i32, %c0_i32_0 : i32, i32
  }
  func.func @transform_6(%arg0: i32) -> (i32, i32) {
    %c0_i32 = arith.constant 0 : i32
    %c0_i32_0 = arith.constant 0 : i32
    %c0_i32_1 = arith.constant 0 : i32
    return %c0_i32, %c0_i32_0 : i32, i32
  }
  func.func @transform_7(%arg0: i32) -> (i32, i32) {
    %c0_i32 = arith.constant 0 : i32
    %c0_i32_0 = arith.constant 0 : i32
    %c0_i32_1 = arith.constant 0 : i32
    return %c0_i32, %c0_i32_0 : i32, i32
  }
  func.func @transform_8(%arg0: i32) -> (i32, i32) {
    %c0_i32 = arith.constant 0 : i32
    %c0_i32_0 = arith.constant 0 : i32
    %c0_i32_1 = arith.constant 0 : i32
    return %c0_i32, %c0_i32_0 : i32, i32
  }
  func.func @transform_9(%arg0: i32) -> (i32, i32) {
    %c0_i32 = arith.constant 0 : i32
    %c0_i32_0 = arith.constant 0 : i32
    %c0_i32_1 = arith.constant 0 : i32
    return %c0_i32, %c0_i32_0 : i32, i32
  }
  func.func @transform_10(%arg0: i32) -> (i32, i32) {
    %c0_i32 = arith.constant 0 : i32
    %c0_i32_0 = arith.constant 0 : i32
    %c0_i32_1 = arith.constant 0 : i32
    return %c0_i32, %c0_i32_0 : i32, i32
  }
  func.func @transform_11(%arg0: i32) -> (i32, i32) {
    %c0_i32 = arith.constant 0 : i32
    %c0_i32_0 = arith.constant 0 : i32
    %c0_i32_1 = arith.constant 0 : i32
    return %c0_i32, %c0_i32_0 : i32, i32
  }
  func.func @transform_12(%arg0: i32) -> (i32, i32) {
    %c0_i32 = arith.constant 0 : i32
    %c0_i32_0 = arith.constant 0 : i32
    %c0_i32_1 = arith.constant 0 : i32
    return %c0_i32, %c0_i32_0 : i32, i32
  }
  func.func @transform_13(%arg0: i32) -> (i32, i32) {
    %c0_i32 = arith.constant 0 : i32
    %c0_i32_0 = arith.constant 0 : i32
    return %c0_i32, %arg0 : i32, i32
  }
}

</mosaic_0001>

<bundles_post_ra>
// kernel: tpu_custom_call.1
= control target key start
LH: loop header
LB: loop body
LE: loop exit
PB: predicated region body
PF: predicated region fallthrough
CT: control target
= control target key end

     0   :  { %s2839_s0 = inlined_call_operand.vmem [shape: f32[128,39], index: 0, kind: input, shape index: {}]   ;;  %s2840_s1 = inlined_call_operand.vmem [shape: f32[39,256], index: 1, kind: input, shape index: {}]   ;;  %s2841_s2 = inlined_call_operand.vmem [shape: f32[1,256], index: 2, kind: input, shape index: {}]   ;;  %s2842_s3 = inlined_call_operand.hbm [shape: f32[256,256], index: 3, kind: input, shape index: {}]   ;;  %s2843_s4 = inlined_call_operand.vmem [shape: f32[1,256], index: 4, kind: input, shape index: {}]   ;;  %s2844_s5 = inlined_call_operand.hbm [shape: f32[256,256], index: 5, kind: input, shape index: {}]   ;;  %s2845_s6 = inlined_call_operand.vmem [shape: f32[1,256], index: 6, kind: input, shape index: {}]   ;;  %s2846_s7 = inlined_call_operand.hbm [shape: f32[256,256], index: 7, kind: input, shape index: {}]   ;;  %s2847_s8 = inlined_call_operand.vmem [shape: f32[1,256], index: 8, kind: input, shape index: {}]   ;;  %s2848_s9 = inlined_call_operand.hbm [shape: f32[256,256], index: 9, kind: input, shape index: {}]   ;;  %s2849_s10 = inlined_call_operand.vmem [shape: f32[1,256], index: 10, kind: input, shape index: {}]   ;;  %s2850_s11 = inlined_call_operand.vmem [shape: f32[1,256], index: 11, kind: input, shape index: {}]   ;;  %s2851_s12 = inlined_call_operand.<no memory space> [shape: f32[1,1], index: 12, kind: input, shape index: {}]   ;;  %s2852_s13 = inlined_call_operand.hbm [shape: f32[1,128], index: 13, kind: output, shape index: {}]  }
   0x1   :  { %v18_v0 = vstv %s2851_s12 }
   0x2   :  { %19 = vst [vmem:[#allocation2] sm:$0x1] %v18_v0 }
   0x3   :  { %20 = vsyncpa [#allocation4], 0 }
   0x4   :  { %21 = vsyncpa [#allocation7], 0 }
   0x5   :  { %22 = vsyncpa [#allocation10], 0 }
   0x6   :  { %23 = vsyncpa [#allocation5], 0  ;;  %s2132_s27 = smov [#allocation6]   ;;  %s2133_s29 = smov [#allocation3]  }
   0x7   :  { %s49_s28 = sshll.u32 %s2132_s27, 4  ;;  %s35_s30 = sshll.u32 %s2133_s29, 4  ;;  %s50_s28 = int_to_ptr.vmem [resolvable:$true] %s49_s28  ;;  %s2213_s30 = int_to_ptr.vmem [resolvable:$true] %s35_s30 }
   0x8   :  { %s2014_s16 = scalar_lea.hbm %s2844_s5, 8192 }
   0x9   :  { %p2015_p0 = scmp.ne.s32.totalorder %s2844_s5, %s2014_s16  ;;  %p2018_p1 = scmp.lt.u32.totalorder %s2014_s16, %s2844_s5 }
   0xb   :  { %p2020_p2 = pnand %p2018_p1, %p2015_p0 }
   0xd   :  { %2023 = shalt.err (!%p2020_p2)
}
   0xe   :  { %s2024_s20 = scalar_lea.vmem %s50_s28, 8192  ;;  %p2029_p4 = scmp.lt.s32.totalorder %s50_s28, %s50_s28 }
   0xf   :  { %p2025_p3 = scmp.ne.s32.totalorder %s50_s28, %s2024_s20  ;;  %p2030_p5 = scmp.lt.s32.totalorder %s2024_s20, %s2024_s20 }
  0x11   :  { %p2031_p6 = por %p2030_p5, %p2029_p4 }
  0x13   :  { %p2032_p7 = pnand %p2031_p6, %p2025_p3 }
  0x15   :  { %2035 = shalt.err (!%p2032_p7)
}
  0x16   :  { %s2134_s21 = smov 256   ;;  %s2135_s22 = smov 16  }
  0x17   :  { %55 = dma.hbm_to_vmem [thread:$0]  %s2844_s5, 8192, %s50_s28, [#allocation7], %s2134_s21, %s2134_s21, %s2135_s22  }
  0x18   :  { %s2036_s27 = scalar_lea.hbm %s2842_s3, 8192 }
  0x19   :  { %p2037_p8 = scmp.ne.s32.totalorder %s2842_s3, %s2036_s27  ;;  %p2040_p9 = scmp.lt.u32.totalorder %s2036_s27, %s2842_s3 }
  0x1b   :  { %p2042_p10 = pnand %p2040_p9, %p2037_p8 }
  0x1d   :  { %2045 = shalt.err (!%p2042_p10)
}
  0x1e   :  { %s2046_s17 = scalar_lea.vmem %s2213_s30, 8192  ;;  %p2051_p12 = scmp.lt.s32.totalorder %s2213_s30, %s2213_s30 }
  0x1f   :  { %p2047_p11 = scmp.ne.s32.totalorder %s2213_s30, %s2046_s17  ;;  %p2052_p13 = scmp.lt.s32.totalorder %s2046_s17, %s2046_s17 }
  0x21   :  { %p2053_p0 = por %p2052_p13, %p2051_p12 }
  0x23   :  { %p2054_p1 = pnand %p2053_p0, %p2047_p11 }
  0x25   :  { %2057 = shalt.err (!%p2054_p1)
}
  0x26   :  { %41 = dma.hbm_to_vmem [thread:$0]  %s2842_s3, 8192, %s2213_s30, [#allocation4], %s2134_s21, %s2134_s21, %s2135_s22  }
  0x27   :  { %s2136_s18 = smov [#allocation8]   ;;  %s2137_s19 = smov [#allocation9]  }
  0x28   :  { %s63_s12 = sshll.u32 %s2136_s18, 4  ;;  %s77_s20 = sshll.u32 %s2137_s19, 4  ;;  %s64_s12 = int_to_ptr.vmem [resolvable:$true] %s63_s12  ;;  %s2250_s20 = int_to_ptr.vmem [resolvable:$true] %s77_s20 }
  0x29   :  { %s2058_s25 = scalar_lea.hbm %s2846_s7, 8192 }
  0x2a   :  { %p2059_p2 = scmp.ne.s32.totalorder %s2846_s7, %s2058_s25  ;;  %p2062_p3 = scmp.lt.u32.totalorder %s2058_s25, %s2846_s7 }
  0x2c   :  { %p2064_p4 = pnand %p2062_p3, %p2059_p2 }
  0x2e   :  { %2067 = shalt.err (!%p2064_p4)
}
  0x2f   :  { %s2068_s3 = scalar_lea.vmem %s64_s12, 8192  ;;  %p2073_p6 = scmp.lt.s32.totalorder %s64_s12, %s64_s12 }
  0x30   :  { %p2069_p5 = scmp.ne.s32.totalorder %s64_s12, %s2068_s3  ;;  %p2074_p7 = scmp.lt.s32.totalorder %s2068_s3, %s2068_s3 }
  0x32   :  { %p2075_p8 = por %p2074_p7, %p2073_p6 }
  0x34   :  { %p2076_p9 = pnand %p2075_p8, %p2069_p5 }
  0x36   :  { %2079 = shalt.err (!%p2076_p9)
}
  0x37   :  { %69 = dma.hbm_to_vmem [thread:$0]  %s2846_s7, 8192, %s64_s12, [#allocation7], %s2134_s21, %s2134_s21, %s2135_s22  }
  0x38   :  { %s2080_s5 = scalar_lea.hbm %s2848_s9, 8192 }
  0x39   :  { %p2081_p10 = scmp.ne.s32.totalorder %s2848_s9, %s2080_s5  ;;  %p2084_p11 = scmp.lt.u32.totalorder %s2080_s5, %s2848_s9 }
  0x3b   :  { %p2086_p12 = pnand %p2084_p11, %p2081_p10 }
  0x3d   :  { %2089 = shalt.err (!%p2086_p12)
}
  0x3e   :  { %s2090_s24 = scalar_lea.vmem %s2250_s20, 8192  ;;  %p2095_p0 = scmp.lt.s32.totalorder %s2250_s20, %s2250_s20 }
  0x3f   :  { %p2091_p13 = scmp.ne.s32.totalorder %s2250_s20, %s2090_s24  ;;  %p2096_p1 = scmp.lt.s32.totalorder %s2090_s24, %s2090_s24 }
  0x41   :  { %p2097_p2 = por %p2096_p1, %p2095_p0 }
  0x43   :  { %p2098_p3 = pnand %p2097_p2, %p2091_p13 }
  0x45   :  { %2101 = shalt.err (!%p2098_p3)
}
  0x46   :  { %83 = dma.hbm_to_vmem [thread:$0]  %s2848_s9, 8192, %s2250_s20, [#allocation10], %s2134_s21, %s2134_s21, %s2135_s22  }
  0x47   :  { %2124 = dma.done.wait [#allocation4], 8192  }
  0x48   :  { %2125 = vsyncadd [#allocation4], 4294959104 }
  0x49   :  { %2126 = dma.done.wait [#allocation7], 16384  }
  0x4a   :  { %2127 = vsyncadd [#allocation7], 4294950912 }
  0x4b   :  { %2128 = dma.done.wait [#allocation10], 8192  }
  0x4c   :  { %2129 = vsyncadd [#allocation10], 4294959104  ;;  %v2138_v1 = vmov 0.0   ;;  %v119_v2 = vld [vmem:[%s2840_s1 + $0x8] sm:$0xff]  ;;  %v121_v3 = vld [vmem:[%s2840_s1 + $0x18] sm:$0xff]  ;;  %vm189_vm0 = vcmask 1046528  }
  0x4d   :  { %260 = vmatprep.mubr.f32.mxu0 %v2138_v1  ;;  %v118_v4 = vld [vmem:[%s2840_s1] sm:$0xff]  ;;  %v1708_v5 = vpack.c.bf16 %v121_v3, %v119_v2  ;;  %v120_v6 = vld [vmem:[%s2840_s1 + $0x10] sm:$0xff]  ;;  %v123_v7 = vld [vmem:[%s2840_s1 + $0x28] sm:$0xff]  ;;  %vm140_vm1 = vcmask 318464   ;;  %vm1571_vm2 = vcmask 130112   ;;  %vm1578_vm3 = vcmask 195712  }
  0x4e   :  { %v125_v8 = vld [vmem:[%s2840_s1 + $0x38] sm:$0xff]  ;;  %v1710_v9 = vpack.c.bf16 %v120_v6, %v118_v4  ;;  %v122_v11 = vld [vmem:[%s2840_s1 + $0x20] sm:$0xff]  ;;  %v124_v12 = vld [vmem:[%s2840_s1 + $0x30] sm:$0xff]  ;;  %vm1585_vm4 = vcmask 261312   ;;  %vm1592_vm5 = vcmask 326912   ;;  %vm1599_vm6 = vcmask 392512  }
  0x4f   :  { %v1712_v10 = vpack.c.bf16 %v125_v8, %v123_v7  ;;  %1709 = vmatprep.subr.bf16.mxu0 %v1708_v5  ;;  %v1714_v13 = vpack.c.bf16 %v124_v12, %v122_v11  ;;  %v127_v14 = vld [vmem:[%s2840_s1 + $0x48] sm:$0x7f]  ;;  %v126_v15 = vld [vmem:[%s2840_s1 + $0x40] sm:$0x7f]  ;;  %v391_v20 = vld [vmem:[#allocation3 + $0x10] sm:$0xff]  ;;  %vm1606_vm7 = vcmask 458112  }
  0x50   :  { %1711 = vmatpush1.bf16.msra.mxu0 %v1710_v9  ;;  %v102_v16 = vld [vmem:[%s2839_s0] sm:$0xff]  ;;  %v390_v17 = vld [vmem:[#allocation3 + $0x8] sm:$0xff]  ;;  %v395_v27 = vld [vmem:[#allocation3 + $0x30] sm:$0xff]  ;;  %vm1613_vm8 = vcmask 523712   ;;  %vm1620_vm9 = vcmask 589312   ;;  %vm1627_vm10 = vcmask 654912  }
  0x51   :  { %1713 = vmatprep.subr.bf16.mxu0 %v1712_v10  ;;  %v392_v18 = vld [vmem:[#allocation3 + $0x18] sm:$0xff]  ;;  %v389_v19 = vld [vmem:[#allocation3] sm:$0xff]  ;;  %v394_v23 = vld [vmem:[#allocation3 + $0x28] sm:$0xff]  ;;  %vm1634_vm11 = vcmask 720512   ;;  %vm1641_vm12 = vcmask 786112   ;;  %vm1648_vm13 = vcmask 851712  }
  0x52   :  { %v1716_v21 = vpack.c.bf16 %v392_v18, %v390_v17  ;;  %v1718_v22 = vpack.c.bf16 %v391_v20, %v389_v19  ;;  %v396_v24 = vld [vmem:[#allocation3 + $0x38] sm:$0xff]  ;;  %v393_v25 = vld [vmem:[#allocation3 + $0x20] sm:$0xff]  ;;  %v398_v28 = vld [vmem:[#allocation3 + $0x48] sm:$0xff]  ;;  %vm1655_vm14 = vcmask 917312   ;;  %vm1662_vm15 = vcmask 982912  }
  0x53   :  { %v1720_v26 = vpack.c.bf16 %v396_v24, %v394_v23  ;;  %v400_v29 = vld [vmem:[#allocation3 + $0x58] sm:$0xff]  ;;  %v1722_v30 = vpack.c.bf16 %v395_v27, %v393_v25  ;;  %v103_v31 = vld [vmem:[%s2839_s0 + $0x8] sm:$0xff]  ;;  %v399_v34 = vld [vmem:[#allocation3 + $0x50] sm:$0xff] }
  0x54   :  { %1715 = vmatpush1.bf16.msra.mxu0 %v1714_v13  ;;  %1717 = vmatprep.subr.bf16.mxu1 %v1716_v21  ;;  %v1724_v32 = vpack.c.bf16 %v400_v29, %v398_v28  ;;  %v397_v33 = vld [vmem:[#allocation3 + $0x40] sm:$0xff]  ;;  %v402_v35 = vld [vmem:[#allocation3 + $0x68] sm:$0xff]  ;;  %v404_v36 = vld [vmem:[#allocation3 + $0x78] sm:$0xff] }
  0x55   :  { %1690 = vmatprep.subr.msk.mxu0 %vm189_vm0, %v127_v14  ;;  %1719 = vmatpush1.bf16.msra.mxu1 %v1718_v22  ;;  %v1726_v37 = vpack.c.bf16 %v399_v34, %v397_v33  ;;  %v104_v38 = vld [vmem:[%s2839_s0 + $0x10] sm:$0xff]  ;;  %v1728_v39 = vpack.c.bf16 %v404_v36, %v402_v35  ;;  %v401_v40 = vld [vmem:[#allocation3 + $0x60] sm:$0xff]  ;;  %v408_v43 = vld [vmem:[#allocation3 + $0x98] sm:$0xff] }
  0x56   :  { %1721 = vmatprep.subr.bf16.mxu1 %v1720_v26  ;;  %v403_v41 = vld [vmem:[#allocation3 + $0x70] sm:$0xff]  ;;  %v406_v42 = vld [vmem:[#allocation3 + $0x88] sm:$0xff]  ;;  %v405_v47 = vld [vmem:[#allocation3 + $0x80] sm:$0xff] }
  0x57   :  { %v1730_v44 = vpack.c.bf16 %v403_v41, %v401_v40  ;;  %v105_v45 = vld [vmem:[%s2839_s0 + $0x18] sm:$0xff]  ;;  %v1732_v46 = vpack.c.bf16 %v408_v43, %v406_v42  ;;  %v410_v49 = vld [vmem:[#allocation3 + $0xa8] sm:$0xff]  ;;  %v106_v52 = vld [vmem:[%s2839_s0 + $0x20] sm:$0xff] }
  0x58   :  { %1691 = vmatpush1.msk.msra.mxu0 %vm189_vm0, %v126_v15  ;;  %v407_v48 = vld [vmem:[#allocation3 + $0x90] sm:$0xff]  ;;  %v412_v50 = vld [vmem:[#allocation3 + $0xb8] sm:$0xff]  ;;  %v409_v54 = vld [vmem:[#allocation3 + $0xa0] sm:$0xff]  ;;  %vm1669_vm0 = vcmask 1048512  }
  0x59   :  { %1692 = vmatmul.mubr.msk.f32.vlgmr.msra.gmra.mrb[0].mxu0 %vm140_vm1, %v102_v16  ;;  %1723 = vmatpush1.bf16.msra.mxu1 %v1722_v30  ;;  %v1734_v51 = vpack.c.bf16 %v407_v48, %v405_v47  ;;  %v1736_v53 = vpack.c.bf16 %v412_v50, %v410_v49  ;;  %v411_v55 = vld [vmem:[#allocation3 + $0xb0] sm:$0xff]  ;;  %v414_v56 = vld [vmem:[#allocation3 + $0xc8] sm:$0xff]  ;;  %v416_v57 = vld [vmem:[#allocation3 + $0xd8] sm:$0xff] }
  0x5a   :  { %266 = vmatprep.mubr.f32.mxu0 %v2138_v1  ;;  %1725 = vmatprep.subr.bf16.mxu1 %v1724_v32  ;;  %v1738_v58 = vpack.c.bf16 %v411_v55, %v409_v54  ;;  %v107_v59 = vld [vmem:[%s2839_s0 + $0x28] sm:$0xff]  ;;  %v1740_v60 = vpack.c.bf16 %v416_v57, %v414_v56  ;;  %v415_v62 = vld [vmem:[#allocation3 + $0xd0] sm:$0xff]  ;;  %v420_v0 = vld [vmem:[#allocation3 + $0xf8] sm:$0xff] }
  0x5b   :  { %v413_v61 = vld [vmem:[#allocation3 + $0xc0] sm:$0xff]  ;;  %v418_v63 = vld [vmem:[#allocation3 + $0xe8] sm:$0xff]  ;;  %v419_v6 = vld [vmem:[#allocation3 + $0xf0] sm:$0xff] }
  0x5c   :  { %v1742_v2 = vpack.c.bf16 %v415_v62, %v413_v61  ;;  %v108_v3 = vld [vmem:[%s2839_s0 + $0x30] sm:$0xff]  ;;  %v1744_v4 = vpack.c.bf16 %v420_v0, %v418_v63  ;;  %v417_v5 = vld [vmem:[#allocation3 + $0xe0] sm:$0xff]  ;;  %v424_v8 = vld [vmem:[#allocation3 + $0x118] sm:$0xff] }
  0x5d   :  { %1693 = vmatmul.mubr.msk.f32.gmra.mrb[2].mxu0 %vm140_vm1, %v103_v31  ;;  %1727 = vmatpush1.bf16.msra.mxu1 %v1726_v37  ;;  %v422_v7 = vld [vmem:[#allocation3 + $0x108] sm:$0xff]  ;;  %v1746_v9 = vpack.c.bf16 %v419_v6, %v417_v5  ;;  %v109_v10 = vld [vmem:[%s2839_s0 + $0x38] sm:$0xff]  ;;  %v421_v12 = vld [vmem:[#allocation3 + $0x100] sm:$0xff] }
  0x5e   :  { %272 = vmatprep.mubr.f32.mxu0 %v2138_v1  ;;  %1729 = vmatprep.subr.bf16.mxu1 %v1728_v39  ;;  %v1748_v11 = vpack.c.bf16 %v424_v8, %v422_v7  ;;  %v423_v13 = vld [vmem:[#allocation3 + $0x110] sm:$0xff]  ;;  %v426_v14 = vld [vmem:[#allocation3 + $0x128] sm:$0xff]  ;;  %v428_v15 = vld [vmem:[#allocation3 + $0x138] sm:$0xff] }
  0x5f   :  { %v1750_v16 = vpack.c.bf16 %v423_v13, %v421_v12  ;;  %v110_v17 = vld [vmem:[%s2839_s0 + $0x40] sm:$0xff]  ;;  %v1752_v18 = vpack.c.bf16 %v428_v15, %v426_v14  ;;  %v427_v20 = vld [vmem:[#allocation3 + $0x130] sm:$0xff]  ;;  %v430_v21 = vld [vmem:[#allocation3 + $0x148] sm:$0xff] }
  0x60   :  { %v425_v19 = vld [vmem:[#allocation3 + $0x120] sm:$0xff]  ;;  %v432_v22 = vld [vmem:[#allocation3 + $0x158] sm:$0xff]  ;;  %v431_v27 = vld [vmem:[#allocation3 + $0x150] sm:$0xff] }
  0x61   :  { %1694 = vmatmul.mubr.msk.f32.gmra.mrb[4].mxu0 %vm140_vm1, %v104_v38  ;;  %1731 = vmatpush1.bf16.msra.mxu1 %v1730_v44  ;;  %v1754_v23 = vpack.c.bf16 %v427_v20, %v425_v19  ;;  %v111_v24 = vld [vmem:[%s2839_s0 + $0x48] sm:$0xff]  ;;  %v1756_v25 = vpack.c.bf16 %v432_v22, %v430_v21  ;;  %v436_v29 = vld [vmem:[#allocation3 + $0x178] sm:$0xff]  ;;  %v112_v31 = vld [vmem:[%s2839_s0 + $0x50] sm:$0xff] }
  0x62   :  { %278 = vmatprep.mubr.f32.mxu0 %v2138_v1  ;;  %1733 = vmatprep.subr.bf16.mxu1 %v1732_v46  ;;  %v429_v26 = vld [vmem:[#allocation3 + $0x140] sm:$0xff]  ;;  %v434_v28 = vld [vmem:[#allocation3 + $0x168] sm:$0xff]  ;;  %v435_v34 = vld [vmem:[#allocation3 + $0x170] sm:$0xff] }
  0x63   :  { %v1758_v30 = vpack.c.bf16 %v431_v27, %v429_v26  ;;  %v1760_v32 = vpack.c.bf16 %v436_v29, %v434_v28  ;;  %v433_v33 = vld [vmem:[#allocation3 + $0x160] sm:$0xff]  ;;  %v438_v35 = vld [vmem:[#allocation3 + $0x188] sm:$0xff]  ;;  %v440_v36 = vld [vmem:[#allocation3 + $0x198] sm:$0xff] }
  0x64   :  { %v1762_v37 = vpack.c.bf16 %v435_v34, %v433_v33  ;;  %v113_v38 = vld [vmem:[%s2839_s0 + $0x58] sm:$0xff]  ;;  %v1764_v39 = vpack.c.bf16 %v440_v36, %v438_v35  ;;  %v437_v40 = vld [vmem:[#allocation3 + $0x180] sm:$0xff]  ;;  %v442_v42 = vld [vmem:[#allocation3 + $0x1a8] sm:$0xff] }
  0x65   :  { %1695 = vmatmul.mubr.msk.f32.gmra.mrb[6].mxu0 %vm140_vm1, %v105_v45  ;;  %1735 = vmatpush1.bf16.msra.mxu1 %v1734_v51  ;;  %v439_v41 = vld [vmem:[#allocation3 + $0x190] sm:$0xff]  ;;  %v444_v43 = vld [vmem:[#allocation3 + $0x1b8] sm:$0xff]  ;;  %v441_v47 = vld [vmem:[#allocation3 + $0x1a0] sm:$0xff] }
  0x66   :  { %284 = vmatprep.mubr.f32.mxu0 %v2138_v1  ;;  %1737 = vmatprep.subr.bf16.mxu1 %v1736_v53  ;;  %v1766_v44 = vpack.c.bf16 %v439_v41, %v437_v40  ;;  %v114_v45 = vld [vmem:[%s2839_s0 + $0x60] sm:$0xff]  ;;  %v1768_v46 = vpack.c.bf16 %v444_v43, %v442_v42  ;;  %v443_v48 = vld [vmem:[#allocation3 + $0x1b0] sm:$0xff]  ;;  %v446_v49 = vld [vmem:[#allocation3 + $0x1c8] sm:$0xff] }
  0x67   :  { %v448_v50 = vld [vmem:[#allocation3 + $0x1d8] sm:$0xff]  ;;  %v1770_v51 = vpack.c.bf16 %v443_v48, %v441_v47  ;;  %v116_v54 = vld [vmem:[%s2839_s0 + $0x70] sm:$0xff]  ;;  %v445_v56 = vld [vmem:[#allocation3 + $0x1c0] sm:$0xff] }
  0x68   :  { %v1772_v53 = vpack.c.bf16 %v448_v50, %v446_v49  ;;  %v117_v55 = vld [vmem:[%s2839_s0 + $0x78] sm:$0xff]  ;;  %v449_v62 = vld [vmem:[#allocation3 + $0x1e0] sm:$0xff]  ;;  %v663_v6 = vld [vmem:[#allocation6 + $0x28] sm:$0xff] }
  0x69   :  { %1696 = vmatmul.mubr.msk.f32.gmra.mrb[8].mxu0 %vm140_vm1, %v106_v52  ;;  %1739 = vmatpush1.bf16.msra.mxu1 %v1738_v58  ;;  %v115_v52 = vld [vmem:[%s2839_s0 + $0x68] sm:$0xff]  ;;  %v447_v57 = vld [vmem:[#allocation3 + $0x1d0] sm:$0xff]  ;;  %v665_v7 = vld [vmem:[#allocation6 + $0x38] sm:$0xff] }
  0x6a   :  { %290 = vmatprep.mubr.f32.mxu0 %v2138_v1  ;;  %1741 = vmatprep.subr.bf16.mxu1 %v1740_v60  ;;  %v1774_v58 = vpack.c.bf16 %v447_v57, %v445_v56  ;;  %v452_v60 = vld [vmem:[#allocation3 + $0x1f8] sm:$0xff]  ;;  %v451_v63 = vld [vmem:[#allocation3 + $0x1f0] sm:$0xff]  ;;  %v667_v12 = vld [vmem:[#allocation6 + $0x48] sm:$0xff] }
  0x6b   :  { %v1778_v0 = vpack.c.bf16 %v451_v63, %v449_v62  ;;  %v660_v5 = vld [vmem:[#allocation6 + $0x10] sm:$0xff]  ;;  %v669_v13 = vld [vmem:[#allocation6 + $0x58] sm:$0xff]  ;;  %v670_v22 = vld [vmem:[#allocation6 + $0x60] sm:$0xff] }
  0x6c   :  { %v1788_v15 = vpack.c.bf16 %v669_v13, %v667_v12  ;;  %v673_v19 = vld [vmem:[#allocation6 + $0x78] sm:$0xff]  ;;  %v674_v28 = vld [vmem:[#allocation6 + $0x80] sm:$0xff]  ;;  %v676_v29 = vld [vmem:[#allocation6 + $0x90] sm:$0xff] }
  0x6d   :  { %1697 = vmatmul.mubr.msk.f32.gmra.mrb[10].mxu0 %vm140_vm1, %v107_v59  ;;  %1743 = vmatpush1.bf16.msra.mxu1 %v1742_v2  ;;  %v450_v59 = vld [vmem:[#allocation3 + $0x1e8] sm:$0xff]  ;;  %v678_v34 = vld [vmem:[#allocation6 + $0xa0] sm:$0xff]  ;;  %v680_v35 = vld [vmem:[#allocation6 + $0xb0] sm:$0xff] }
  0x6e   :  { %296 = vmatprep.mubr.f32.mxu0 %v2138_v1  ;;  %1745 = vmatprep.subr.bf16.mxu1 %v1744_v4  ;;  %v1776_v61 = vpack.c.bf16 %v452_v60, %v450_v59  ;;  %v659_v2 = vld [vmem:[#allocation6 + $0x8] sm:$0xff]  ;;  %v682_v40 = vld [vmem:[#allocation6 + $0xc0] sm:$0xff]  ;;  %v684_v41 = vld [vmem:[#allocation6 + $0xd0] sm:$0xff] }
  0x6f   :  { %v683_v36 = vld [vmem:[#allocation6 + $0xc8] sm:$0xff]  ;;  %v689_v43 = vld [vmem:[#allocation6 + $0xf8] sm:$0xff]  ;;  %v688_v47 = vld [vmem:[#allocation6 + $0xf0] sm:$0xff] }
  0x70   :  { %v687_v42 = vld [vmem:[#allocation6 + $0xe8] sm:$0xff]  ;;  %v693_v49 = vld [vmem:[#allocation6 + $0x118] sm:$0xff]  ;;  %v696_v59 = vld [vmem:[#allocation6 + $0x130] sm:$0xff] }
  0x71   :  { %1698 = vmatmul.mubr.msk.f32.gmra.mrb[12].mxu0 %vm140_vm1, %v108_v3  ;;  %1747 = vmatpush1.bf16.msra.mxu1 %v1746_v9  ;;  %v658_v3 = vld [vmem:[#allocation6] sm:$0xff]  ;;  %v1784_v9 = vpack.c.bf16 %v665_v7, %v663_v6  ;;  %v691_v48 = vld [vmem:[#allocation6 + $0x108] sm:$0xff]  ;;  %v704_v7 = vld [vmem:[#allocation6 + $0x170] sm:$0xff] }
  0x72   :  { %302 = vmatprep.mubr.f32.mxu0 %v2138_v1  ;;  %1749 = vmatprep.subr.bf16.mxu1 %v1748_v11  ;;  %v1782_v8 = vpack.c.bf16 %v660_v5, %v658_v3  ;;  %v664_v11 = vld [vmem:[#allocation6 + $0x30] sm:$0xff]  ;;  %v699_v60 = vld [vmem:[#allocation6 + $0x148] sm:$0xff]  ;;  %v705_v3 = vld [vmem:[#allocation6 + $0x178] sm:$0xff] }
  0x73   :  { %v702_v6 = vld [vmem:[#allocation6 + $0x160] sm:$0xff]  ;;  %v708_v13 = vld [vmem:[#allocation6 + $0x190] sm:$0xff] }
  0x74   :  { %v706_v12 = vld [vmem:[#allocation6 + $0x180] sm:$0xff] }
  0x75   :  { %1699 = vmatmul.mubr.msk.f32.gmra.mrb[14].mxu0 %vm140_vm1, %v109_v10  ;;  %1751 = vmatpush1.bf16.msra.mxu1 %v1750_v16  ;;  %v662_v10 = vld [vmem:[#allocation6 + $0x20] sm:$0xff] }
  0x76   :  { %308 = vmatprep.mubr.f32.mxu0 %v2138_v1  ;;  %1753 = vmatprep.subr.bf16.mxu1 %v1752_v18  ;;  %v1786_v14 = vpack.c.bf16 %v664_v11, %v662_v10  ;;  %v666_v16 = vld [vmem:[#allocation6 + $0x40] sm:$0xff]  ;;  %v671_v18 = vld [vmem:[#allocation6 + $0x68] sm:$0xff]  ;;  %v1826_v10 = vpack.c.bf16 %v704_v7, %v702_v6 }
  0x77   :  { %v1792_v21 = vpack.c.bf16 %v673_v19, %v671_v18  ;;  %v710_v19 = vld [vmem:[#allocation6 + $0x1a0] sm:$0xff] }
  0x79   :  { %1700 = vmatmul.mubr.msk.f32.gmra.mrb[16].mxu0 %vm140_vm1, %v110_v17  ;;  %1755 = vmatpush1.bf16.msra.mxu1 %v1754_v23  ;;  %v668_v17 = vld [vmem:[#allocation6 + $0x50] sm:$0xff] }
  0x7a   :  { %314 = vmatprep.mubr.f32.mxu0 %v2138_v1  ;;  %1757 = vmatprep.subr.bf16.mxu1 %v1756_v25  ;;  %v1790_v20 = vpack.c.bf16 %v668_v17, %v666_v16  ;;  %v672_v23 = vld [vmem:[#allocation6 + $0x70] sm:$0xff]  ;;  %v677_v25 = vld [vmem:[#allocation6 + $0x98] sm:$0xff]  ;;  %v1830_v17 = vpack.c.bf16 %v708_v13, %v706_v12 }
  0x7b   :  { %v1794_v26 = vpack.c.bf16 %v672_v23, %v670_v22  ;;  %v713_v16 = vld [vmem:[#allocation6 + $0x1b8] sm:$0xff]  ;;  %v715_v22 = vld [vmem:[#allocation6 + $0x1c8] sm:$0xff] }
  0x7c   :  { %v717_v23 = vld [vmem:[#allocation6 + $0x1d8] sm:$0xff] }
  0x7d   :  { %1701 = vmatmul.mubr.msk.f32.gmra.mrb[18].mxu0 %vm140_vm1, %v111_v24  ;;  %1759 = vmatpush1.bf16.msra.mxu1 %v1758_v30  ;;  %v675_v24 = vld [vmem:[#allocation6 + $0x88] sm:$0xff] }
  0x7e   :  { %320 = vmatprep.mubr.f32.mxu0 %v2138_v1  ;;  %1761 = vmatprep.subr.bf16.mxu1 %v1760_v32  ;;  %v1796_v27 = vpack.c.bf16 %v677_v25, %v675_v24  ;;  %v679_v30 = vld [vmem:[#allocation6 + $0xa8] sm:$0xff]  ;;  %v1798_v32 = vpack.c.bf16 %v676_v29, %v674_v28  ;;  %v1836_v25 = vpack.c.bf16 %v717_v23, %v715_v22  ;;  %v128_v29 = vld [vmem:[%s2841_s2] sm:$0x3] }
  0x81   :  { %1702 = vmatmul.mubr.msk.f32.gmra.mrb[20].mxu0 %vm140_vm1, %v112_v31  ;;  %1763 = vmatpush1.bf16.msra.mxu1 %v1762_v37  ;;  %v681_v31 = vld [vmem:[#allocation6 + $0xb8] sm:$0xff] }
  0x82   :  { %326 = vmatprep.mubr.f32.mxu0 %v2138_v1  ;;  %1765 = vmatprep.subr.bf16.mxu1 %v1764_v39  ;;  %v1800_v33 = vpack.c.bf16 %v681_v31, %v679_v30  ;;  %v685_v37 = vld [vmem:[#allocation6 + $0xd8] sm:$0xff] }
  0x83   :  { %v1804_v39 = vpack.c.bf16 %v685_v37, %v683_v36 }
  0x85   :  { %1703 = vmatmul.mubr.msk.f32.gmra.mrb[22].mxu0 %vm140_vm1, %v113_v38  ;;  %1767 = vmatpush1.bf16.msra.mxu1 %v1766_v44  ;;  %v1802_v38 = vpack.c.bf16 %v680_v35, %v678_v34  ;;  %v1806_v44 = vpack.c.bf16 %v684_v41, %v682_v40 }
  0x86   :  { %332 = vmatprep.mubr.f32.mxu0 %v2138_v1  ;;  %1769 = vmatprep.subr.bf16.mxu1 %v1768_v46  ;;  %v686_v46 = vld [vmem:[#allocation6 + $0xe0] sm:$0xff] }
  0x87   :  { %v1810_v50 = vpack.c.bf16 %v688_v47, %v686_v46 }
  0x89   :  { %1704 = vmatmul.mubr.msk.f32.gmra.mrb[24].mxu0 %vm140_vm1, %v114_v45  ;;  %1771 = vmatpush1.bf16.msra.mxu1 %v1770_v51  ;;  %v1808_v45 = vpack.c.bf16 %v689_v43, %v687_v42  ;;  %v1812_v51 = vpack.c.bf16 %v693_v49, %v691_v48 }
  0x8a   :  { %338 = vmatprep.mubr.f32.mxu0 %v2138_v1  ;;  %1773 = vmatprep.subr.bf16.mxu1 %v1772_v53  ;;  %v692_v53 = vld [vmem:[#allocation6 + $0x110] sm:$0xff] }
  0x8d   :  { %1705 = vmatmul.mubr.msk.f32.gmra.mrb[26].mxu0 %vm140_vm1, %v115_v52  ;;  %1775 = vmatpush1.bf16.msra.mxu1 %v1774_v58  ;;  %v690_v52 = vld [vmem:[#allocation6 + $0x100] sm:$0xff] }
  0x8e   :  { %344 = vmatprep.mubr.f32.mxu0 %v2138_v1  ;;  %1777 = vmatprep.subr.bf16.mxu1 %v1776_v61  ;;  %v1814_v56 = vpack.c.bf16 %v692_v53, %v690_v52  ;;  %v694_v58 = vld [vmem:[#allocation6 + $0x120] sm:$0xff]  ;;  %v701_v61 = vld [vmem:[#allocation6 + $0x158] sm:$0xff] }
  0x8f   :  { %v1818_v62 = vpack.c.bf16 %v696_v59, %v694_v58  ;;  %v1820_v63 = vpack.c.bf16 %v701_v61, %v699_v60 }
  0x91   :  { %1706 = vmatmul.mubr.msk.f32.gmra.mrb[28].mxu0 %vm140_vm1, %v116_v54  ;;  %1779 = vmatpush1.bf16.msra.mxu1 %v1778_v0  ;;  %v695_v54 = vld [vmem:[#allocation6 + $0x128] sm:$0xff]  ;;  %v698_v0 = vld [vmem:[#allocation6 + $0x140] sm:$0xff] }
  0x92   :  { %350 = vmatprep.mubr.f32.mxu0 %v2138_v1  ;;  %v661_v1 = vld [vmem:[#allocation6 + $0x18] sm:$0xff] }
  0x93   :  { %v1780_v4 = vpack.c.bf16 %v661_v1, %v659_v2  ;;  %v700_v2 = vld [vmem:[#allocation6 + $0x150] sm:$0xff]  ;;  %v703_v1 = vld [vmem:[#allocation6 + $0x168] sm:$0xff] }
  0x94   :  { %v1824_v5 = vpack.c.bf16 %v705_v3, %v703_v1 }
  0x95   :  { %1707 = vmatmul.mubr.msk.f32.gmra.mrb[30].mxu0 %vm140_vm1, %v117_v55  ;;  %1781 = vmatprep.subr.bf16.mxu0 %v1780_v4  ;;  %v697_v55 = vld [vmem:[#allocation6 + $0x138] sm:$0xff]  ;;  %v1822_v4 = vpack.c.bf16 %v700_v2, %v698_v0 }
  0x96   :  { %1783 = vmatpush1.bf16.msra.mxu0 %v1782_v8  ;;  %v1816_v57 = vpack.c.bf16 %v697_v55, %v695_v54  ;;  %v707_v8 = vld [vmem:[#allocation6 + $0x188] sm:$0xff] }
  0x97   :  { %1785 = vmatprep.subr.bf16.mxu0 %v1784_v9  ;;  %v709_v9 = vld [vmem:[#allocation6 + $0x198] sm:$0xff] }
  0x98   :  { %v1828_v11 = vpack.c.bf16 %v709_v9, %v707_v8 }
  0x9a   :  { %1787 = vmatpush1.bf16.msra.mxu0 %v1786_v14  ;;  %v130_v14 = vlaneseq }
  0x9b   :  { %1789 = vmatprep.subr.bf16.mxu0 %v1788_v15  ;;  %v711_v15 = vld [vmem:[#allocation6 + $0x1a8] sm:$0xff] }
  0x9c   :  { %v1832_v18 = vpack.c.bf16 %v713_v16, %v711_v15 }
  0x9e   :  { %1791 = vmatpush1.bf16.msra.mxu0 %v1790_v20  ;;  %v712_v20 = vld [vmem:[#allocation6 + $0x1b0] sm:$0xff] }
  0x9f   :  { %1793 = vmatprep.subr.bf16.mxu0 %v1792_v21  ;;  %v2400_v21 = vshrl.u32 %v130_v14, 7  ;;  %v1834_v24 = vpack.c.bf16 %v712_v20, %v710_v19 }
  0xa1   :  { %v2403_v28 = vsub.s32 0, %v2400_v21  ;;  %v2409_v30 = vsub.s32 1, %v2400_v21 }
  0xa2   :  { %1795 = vmatpush1.bf16.msra.mxu0 %v1794_v26  ;;  %v714_v26 = vld [vmem:[#allocation6 + $0x1c0] sm:$0xff] }
  0xa3   :  { %1797 = vmatprep.subr.bf16.mxu0 %v1796_v27  ;;  %v716_v27 = vld [vmem:[#allocation6 + $0x1d0] sm:$0xff] }
  0xa4   :  { %v1838_v31 = vpack.c.bf16 %v716_v27, %v714_v26 }
  0xa6   :  { %1799 = vmatpush1.bf16.msra.mxu0 %v1798_v32  ;;  %v2412_v32 = vrot.slane %v128_v29, %v2403_v28 }
  0xa7   :  { %1801 = vmatprep.subr.bf16.mxu0 %v1800_v33  ;;  %v2415_v33 = vrot.slane %v128_v29, %v2409_v30 }
  0xaa   :  { %1803 = vmatpush1.bf16.msra.mxu0 %v1802_v38 }
  0xab   :  { %1805 = vmatprep.subr.bf16.mxu0 %v1804_v39 }
  0xae   :  { %1807 = vmatpush1.bf16.msra.mxu0 %v1806_v44 }
  0xaf   :  { %1809 = vmatprep.subr.bf16.mxu0 %v1808_v45 }
  0xb2   :  { %1811 = vmatpush1.bf16.msra.mxu0 %v1810_v50 }
  0xb3   :  { %1813 = vmatprep.subr.bf16.mxu0 %v1812_v51 }
  0xb6   :  { %1815 = vmatpush1.bf16.msra.mxu0 %v1814_v56 }
  0xb7   :  { %1817 = vmatprep.subr.bf16.mxu0 %v1816_v57 }
  0xba   :  { %1819 = vmatpush1.bf16.msra.mxu0 %v1818_v62 }
  0xbb   :  { %1821 = vmatprep.subr.bf16.mxu0 %v1820_v63 }
  0xbe   :  { %1823 = vmatpush1.bf16.msra.mxu0 %v1822_v4 }
  0xbf   :  { %1825 = vmatprep.subr.bf16.mxu0 %v1824_v5 }
  0xc2   :  { %1827 = vmatpush1.bf16.msra.mxu0 %v1826_v10 }
  0xc3   :  { %1829 = vmatprep.subr.bf16.mxu0 %v1828_v11 }
  0xc6   :  { %1831 = vmatpush1.bf16.msra.mxu0 %v1830_v17 }
  0xc7   :  { %1833 = vmatprep.subr.bf16.mxu0 %v1832_v18 }
  0xca   :  { %1835 = vmatpush1.bf16.msra.mxu0 %v1834_v24 }
  0xcb   :  { %1837 = vmatprep.subr.bf16.mxu0 %v1836_v25 }
  0xce   :  { %1839 = vmatpush1.bf16.msra.mxu0 %v1838_v31 }
 0x12c   :  { %v262_v34 = vpop.f32.mrb[0].mxu0 }
 0x12d   :  { %v263_v35 = vadd.f32 %v262_v34, %v2412_v32  ;;  %v264_v36 = vpop.f32.mrb[1].mxu0 }
 0x12e   :  { %v265_v37 = vadd.f32 %v264_v36, %v2415_v33 }
 0x12f   :  { %v357_v40 = vmax.f32 %v263_v35, 0.0 }
 0x130   :  { %v268_v38 = vpop.f32.mrb[2].mxu0  ;;  %v358_v39 = vmax.f32 %v265_v37, 0.0 }
 0x131   :  { %v269_v41 = vadd.f32 %v268_v38, %v2412_v32  ;;  %v270_v42 = vpop.f32.mrb[3].mxu0 }
 0x132   :  { %v271_v43 = vadd.f32 %v270_v42, %v2415_v33  ;;  %529 = vmatprep.mubr.f32.mxu1 %v358_v39 }
 0x133   :  { %530 = vmatmul.mubr.f32.vlgmr.msra.gmra.mrb[0].mxu1 %v357_v40  ;;  %v359_v46 = vmax.f32 %v269_v41, 0.0 }
 0x134   :  { %v360_v44 = vmax.f32 %v271_v43, 0.0  ;;  %v274_v45 = vpop.f32.mrb[4].mxu0 }
 0x135   :  { %v275_v47 = vadd.f32 %v274_v45, %v2412_v32  ;;  %v276_v48 = vpop.f32.mrb[5].mxu0 }
 0x136   :  { %v277_v49 = vadd.f32 %v276_v48, %v2415_v33  ;;  %535 = vmatprep.mubr.f32.mxu1 %v360_v44 }
 0x137   :  { %536 = vmatmul.mubr.f32.gmra.mrb[2].mxu1 %v359_v46  ;;  %v361_v52 = vmax.f32 %v275_v47, 0.0 }
 0x138   :  { %v362_v50 = vmax.f32 %v277_v49, 0.0  ;;  %v280_v51 = vpop.f32.mrb[6].mxu0 }
 0x139   :  { %v281_v53 = vadd.f32 %v280_v51, %v2412_v32  ;;  %v282_v54 = vpop.f32.mrb[7].mxu0 }
 0x13a   :  { %v283_v55 = vadd.f32 %v282_v54, %v2415_v33  ;;  %541 = vmatprep.mubr.f32.mxu1 %v362_v50 }
 0x13b   :  { %542 = vmatmul.mubr.f32.gmra.mrb[4].mxu1 %v361_v52  ;;  %v363_v58 = vmax.f32 %v281_v53, 0.0 }
 0x13c   :  { %v364_v56 = vmax.f32 %v283_v55, 0.0  ;;  %v286_v57 = vpop.f32.mrb[8].mxu0 }
 0x13d   :  { %v287_v59 = vadd.f32 %v286_v57, %v2412_v32  ;;  %v288_v60 = vpop.f32.mrb[9].mxu0 }
 0x13e   :  { %v289_v61 = vadd.f32 %v288_v60, %v2415_v33  ;;  %547 = vmatprep.mubr.f32.mxu1 %v364_v56 }
 0x13f   :  { %548 = vmatmul.mubr.f32.gmra.mrb[6].mxu1 %v363_v58  ;;  %v365_v0 = vmax.f32 %v287_v59, 0.0 }
 0x140   :  { %v366_v62 = vmax.f32 %v289_v61, 0.0  ;;  %v292_v63 = vpop.f32.mrb[10].mxu0 }
 0x141   :  { %v293_v2 = vadd.f32 %v292_v63, %v2412_v32  ;;  %v294_v1 = vpop.f32.mrb[11].mxu0 }
 0x142   :  { %v295_v3 = vadd.f32 %v294_v1, %v2415_v33  ;;  %553 = vmatprep.mubr.f32.mxu1 %v366_v62 }
 0x143   :  { %554 = vmatmul.mubr.f32.gmra.mrb[8].mxu1 %v365_v0  ;;  %v367_v6 = vmax.f32 %v293_v2, 0.0 }
 0x144   :  { %v368_v4 = vmax.f32 %v295_v3, 0.0  ;;  %v298_v5 = vpop.f32.mrb[12].mxu0 }
 0x145   :  { %v299_v7 = vadd.f32 %v298_v5, %v2412_v32  ;;  %v300_v8 = vpop.f32.mrb[13].mxu0 }
 0x146   :  { %v301_v9 = vadd.f32 %v300_v8, %v2415_v33  ;;  %559 = vmatprep.mubr.f32.mxu1 %v368_v4  ;;  %v719_v8 = vld [vmem:[#allocation6 + $0x1e8] sm:$0xff] }
 0x147   :  { %560 = vmatmul.mubr.f32.gmra.mrb[10].mxu1 %v367_v6  ;;  %v369_v12 = vmax.f32 %v299_v7, 0.0 }
 0x148   :  { %v370_v10 = vmax.f32 %v301_v9, 0.0  ;;  %v304_v11 = vpop.f32.mrb[14].mxu0  ;;  %v721_v9 = vld [vmem:[#allocation6 + $0x1f8] sm:$0xff] }
 0x149   :  { %v305_v13 = vadd.f32 %v304_v11, %v2412_v32  ;;  %v306_v15 = vpop.f32.mrb[15].mxu0  ;;  %v718_v11 = vld [vmem:[#allocation6 + $0x1e0] sm:$0xff] }
 0x14a   :  { %v307_v16 = vadd.f32 %v306_v15, %v2415_v33  ;;  %565 = vmatprep.mubr.f32.mxu1 %v370_v10  ;;  %v1840_v10 = vpack.c.bf16 %v721_v9, %v719_v8  ;;  %v928_v15 = vld [vmem:[#allocation8 + $0x8] sm:$0xff]  ;;  %v966_v8 = vld [vmem:[#allocation8 + $0x138] sm:$0xff] }
 0x14b   :  { %566 = vmatmul.mubr.f32.gmra.mrb[12].mxu1 %v369_v12  ;;  %v371_v19 = vmax.f32 %v305_v13, 0.0  ;;  %v720_v12 = vld [vmem:[#allocation6 + $0x1f0] sm:$0xff] }
 0x14c   :  { %v372_v17 = vmax.f32 %v307_v16, 0.0  ;;  %v310_v18 = vpop.f32.mrb[16].mxu0  ;;  %v1842_v13 = vpack.c.bf16 %v720_v12, %v718_v11  ;;  %1841 = vmatprep.subr.bf16.mxu0 %v1840_v10  ;;  %v930_v16 = vld [vmem:[#allocation8 + $0x18] sm:$0xff]  ;;  %v963_v11 = vld [vmem:[#allocation8 + $0x120] sm:$0xff]  ;;  %v965_v12 = vld [vmem:[#allocation8 + $0x130] sm:$0xff] }
 0x14d   :  { %v311_v20 = vadd.f32 %v310_v18, %v2412_v32  ;;  %v312_v22 = vpop.f32.mrb[17].mxu0  ;;  %v929_v18 = vld [vmem:[#allocation8 + $0x10] sm:$0xff] }
 0x14e   :  { %v313_v23 = vadd.f32 %v312_v22, %v2415_v33  ;;  %571 = vmatprep.mubr.f32.mxu1 %v372_v17  ;;  %1843 = vmatpush1.bf16.msra.mxu0 %v1842_v13  ;;  %v1844_v17 = vpack.c.bf16 %v930_v16, %v928_v15  ;;  %v968_v13 = vld [vmem:[#allocation8 + $0x148] sm:$0xff]  ;;  %v970_v15 = vld [vmem:[#allocation8 + $0x158] sm:$0xff]  ;;  %v1882_v16 = vpack.c.bf16 %v965_v12, %v963_v11 }
 0x14f   :  { %572 = vmatmul.mubr.f32.gmra.mrb[14].mxu1 %v371_v19  ;;  %v373_v26 = vmax.f32 %v311_v20, 0.0  ;;  %v934_v19 = vld [vmem:[#allocation8 + $0x38] sm:$0xff] }
 0x150   :  { %v374_v24 = vmax.f32 %v313_v23, 0.0  ;;  %v316_v25 = vpop.f32.mrb[18].mxu0  ;;  %v931_v23 = vld [vmem:[#allocation8 + $0x20] sm:$0xff]  ;;  %1845 = vmatprep.subr.bf16.mxu1 %v1844_v17 }
 0x151   :  { %v317_v27 = vadd.f32 %v316_v25, %v2412_v32  ;;  %v318_v29 = vpop.f32.mrb[19].mxu0  ;;  %v936_v25 = vld [vmem:[#allocation8 + $0x48] sm:$0xff]  ;;  %v967_v17 = vld [vmem:[#allocation8 + $0x140] sm:$0xff] }
 0x152   :  { %v319_v31 = vadd.f32 %v318_v29, %v2415_v33  ;;  %577 = vmatprep.mubr.f32.mxu1 %v374_v24  ;;  %v933_v24 = vld [vmem:[#allocation8 + $0x30] sm:$0xff] }
 0x153   :  { %578 = vmatmul.mubr.f32.gmra.mrb[16].mxu1 %v373_v26  ;;  %v375_v36 = vmax.f32 %v317_v27, 0.0  ;;  %v938_v26 = vld [vmem:[#allocation8 + $0x58] sm:$0xff]  ;;  %v1850_v27 = vpack.c.bf16 %v933_v24, %v931_v23  ;;  %v971_v23 = vld [vmem:[#allocation8 + $0x160] sm:$0xff]  ;;  %v973_v24 = vld [vmem:[#allocation8 + $0x170] sm:$0xff] }
 0x154   :  { %v376_v34 = vmax.f32 %v319_v31, 0.0  ;;  %v322_v35 = vpop.f32.mrb[20].mxu0  ;;  %v1852_v29 = vpack.c.bf16 %v938_v26, %v936_v25  ;;  %v935_v31 = vld [vmem:[#allocation8 + $0x40] sm:$0xff]  ;;  %v976_v25 = vld [vmem:[#allocation8 + $0x188] sm:$0xff]  ;;  %v978_v26 = vld [vmem:[#allocation8 + $0x198] sm:$0xff] }
 0x155   :  { %v323_v37 = vadd.f32 %v322_v35, %v2412_v32  ;;  %v324_v38 = vpop.f32.mrb[21].mxu0  ;;  %v940_v35 = vld [vmem:[#allocation8 + $0x68] sm:$0xff] }
 0x156   :  { %v325_v39 = vadd.f32 %v324_v38, %v2415_v33  ;;  %583 = vmatprep.mubr.f32.mxu1 %v376_v34  ;;  %v937_v34 = vld [vmem:[#allocation8 + $0x50] sm:$0xff] }
 0x157   :  { %584 = vmatmul.mubr.f32.gmra.mrb[18].mxu1 %v375_v36  ;;  %v377_v42 = vmax.f32 %v323_v37, 0.0  ;;  %v942_v36 = vld [vmem:[#allocation8 + $0x78] sm:$0xff]  ;;  %v1854_v37 = vpack.c.bf16 %v937_v34, %v935_v31  ;;  %v975_v31 = vld [vmem:[#allocation8 + $0x180] sm:$0xff]  ;;  %v977_v34 = vld [vmem:[#allocation8 + $0x190] sm:$0xff] }
 0x158   :  { %v378_v40 = vmax.f32 %v325_v39, 0.0  ;;  %v328_v41 = vpop.f32.mrb[22].mxu0  ;;  %v1856_v38 = vpack.c.bf16 %v942_v36, %v940_v35  ;;  %v939_v39 = vld [vmem:[#allocation8 + $0x60] sm:$0xff]  ;;  %v980_v35 = vld [vmem:[#allocation8 + $0x1a8] sm:$0xff]  ;;  %v982_v36 = vld [vmem:[#allocation8 + $0x1b8] sm:$0xff] }
 0x159   :  { %v329_v43 = vadd.f32 %v328_v41, %v2412_v32  ;;  %v330_v44 = vpop.f32.mrb[23].mxu0  ;;  %v944_v41 = vld [vmem:[#allocation8 + $0x88] sm:$0xff] }
 0x15a   :  { %v331_v45 = vadd.f32 %v330_v44, %v2415_v33  ;;  %589 = vmatprep.mubr.f32.mxu1 %v378_v40  ;;  %v941_v40 = vld [vmem:[#allocation8 + $0x70] sm:$0xff] }
 0x15b   :  { %590 = vmatmul.mubr.f32.gmra.mrb[20].mxu1 %v377_v42  ;;  %v379_v48 = vmax.f32 %v329_v43, 0.0  ;;  %v946_v42 = vld [vmem:[#allocation8 + $0x98] sm:$0xff]  ;;  %v1858_v43 = vpack.c.bf16 %v941_v40, %v939_v39  ;;  %v979_v39 = vld [vmem:[#allocation8 + $0x1a0] sm:$0xff]  ;;  %v981_v40 = vld [vmem:[#allocation8 + $0x1b0] sm:$0xff] }
 0x15c   :  { %v380_v46 = vmax.f32 %v331_v45, 0.0  ;;  %v334_v47 = vpop.f32.mrb[24].mxu0  ;;  %v1860_v44 = vpack.c.bf16 %v946_v42, %v944_v41  ;;  %v943_v45 = vld [vmem:[#allocation8 + $0x80] sm:$0xff]  ;;  %v984_v41 = vld [vmem:[#allocation8 + $0x1c8] sm:$0xff]  ;;  %v986_v42 = vld [vmem:[#allocation8 + $0x1d8] sm:$0xff] }
 0x15d   :  { %v335_v49 = vadd.f32 %v334_v47, %v2412_v32  ;;  %v336_v50 = vpop.f32.mrb[25].mxu0  ;;  %v948_v47 = vld [vmem:[#allocation8 + $0xa8] sm:$0xff] }
 0x15e   :  { %v337_v51 = vadd.f32 %v336_v50, %v2415_v33  ;;  %595 = vmatprep.mubr.f32.mxu1 %v380_v46  ;;  %v945_v46 = vld [vmem:[#allocation8 + $0x90] sm:$0xff] }
 0x15f   :  { %596 = vmatmul.mubr.f32.gmra.mrb[22].mxu1 %v379_v48  ;;  %v381_v54 = vmax.f32 %v335_v49, 0.0  ;;  %v950_v48 = vld [vmem:[#allocation8 + $0xb8] sm:$0xff]  ;;  %v1862_v49 = vpack.c.bf16 %v945_v46, %v943_v45  ;;  %v983_v45 = vld [vmem:[#allocation8 + $0x1c0] sm:$0xff]  ;;  %v985_v46 = vld [vmem:[#allocation8 + $0x1d0] sm:$0xff] }
 0x160   :  { %v382_v52 = vmax.f32 %v337_v51, 0.0  ;;  %v340_v53 = vpop.f32.mrb[26].mxu0  ;;  %v1864_v50 = vpack.c.bf16 %v950_v48, %v948_v47  ;;  %v947_v51 = vld [vmem:[#allocation8 + $0xa0] sm:$0xff]  ;;  %v1902_v48 = vpack.c.bf16 %v985_v46, %v983_v45 }
 0x161   :  { %v341_v55 = vadd.f32 %v340_v53, %v2412_v32  ;;  %v342_v56 = vpop.f32.mrb[27].mxu0  ;;  %v952_v53 = vld [vmem:[#allocation8 + $0xc8] sm:$0xff]  ;;  %v453_v47 = vld [vmem:[%s2843_s4] sm:$0x3] }
 0x162   :  { %v343_v57 = vadd.f32 %v342_v56, %v2415_v33  ;;  %601 = vmatprep.mubr.f32.mxu1 %v382_v52  ;;  %v949_v52 = vld [vmem:[#allocation8 + $0xb0] sm:$0xff] }
 0x163   :  { %602 = vmatmul.mubr.f32.gmra.mrb[24].mxu1 %v381_v54  ;;  %v383_v60 = vmax.f32 %v341_v55, 0.0  ;;  %v954_v54 = vld [vmem:[#allocation8 + $0xd8] sm:$0xff]  ;;  %v1866_v55 = vpack.c.bf16 %v949_v52, %v947_v51 }
 0x164   :  { %v384_v58 = vmax.f32 %v343_v57, 0.0  ;;  %v346_v59 = vpop.f32.mrb[28].mxu0  ;;  %v1868_v56 = vpack.c.bf16 %v954_v54, %v952_v53  ;;  %v951_v57 = vld [vmem:[#allocation8 + $0xc0] sm:$0xff] }
 0x165   :  { %v347_v61 = vadd.f32 %v346_v59, %v2412_v32  ;;  %v348_v62 = vpop.f32.mrb[29].mxu0  ;;  %v956_v59 = vld [vmem:[#allocation8 + $0xe8] sm:$0xff] }
 0x166   :  { %v349_v63 = vadd.f32 %v348_v62, %v2415_v33  ;;  %607 = vmatprep.mubr.f32.mxu1 %v384_v58  ;;  %v953_v58 = vld [vmem:[#allocation8 + $0xd0] sm:$0xff] }
 0x167   :  { %608 = vmatmul.mubr.f32.gmra.mrb[26].mxu1 %v383_v60  ;;  %v385_v1 = vmax.f32 %v347_v61, 0.0  ;;  %v958_v60 = vld [vmem:[#allocation8 + $0xf8] sm:$0xff]  ;;  %v1870_v61 = vpack.c.bf16 %v953_v58, %v951_v57 }
 0x168   :  { %v386_v0 = vmax.f32 %v349_v63, 0.0  ;;  %v352_v2 = vpop.f32.mrb[30].mxu0  ;;  %v1872_v62 = vpack.c.bf16 %v958_v60, %v956_v59  ;;  %v955_v63 = vld [vmem:[#allocation8 + $0xe0] sm:$0xff] }
 0x169   :  { %v353_v3 = vadd.f32 %v352_v2, %v2412_v32  ;;  %v354_v4 = vpop.f32.mrb[31].mxu0  ;;  %v927_v32 = vld [vmem:[#allocation8] sm:$0xff]  ;;  %v960_v2 = vld [vmem:[#allocation8 + $0x108] sm:$0xff] }
 0x16a   :  { %v355_v5 = vadd.f32 %v354_v4, %v2415_v33  ;;  %613 = vmatprep.mubr.f32.mxu1 %v386_v0  ;;  %v932_v33 = vld [vmem:[#allocation8 + $0x28] sm:$0xff]  ;;  %v1846_v20 = vpack.c.bf16 %v929_v18, %v927_v32  ;;  %v957_v0 = vld [vmem:[#allocation8 + $0xf0] sm:$0xff]  ;;  %v1884_v32 = vpack.c.bf16 %v970_v15, %v968_v13 }
 0x16b   :  { %614 = vmatmul.mubr.f32.gmra.mrb[28].mxu1 %v385_v1  ;;  %v387_v7 = vmax.f32 %v353_v3, 0.0  ;;  %v1848_v22 = vpack.c.bf16 %v934_v19, %v932_v33  ;;  %v962_v1 = vld [vmem:[#allocation8 + $0x118] sm:$0xff]  ;;  %v1874_v3 = vpack.c.bf16 %v957_v0, %v955_v63  ;;  %v969_v18 = vld [vmem:[#allocation8 + $0x150] sm:$0xff]  ;;  %v972_v33 = vld [vmem:[#allocation8 + $0x168] sm:$0xff] }
 0x16c   :  { %v388_v6 = vmax.f32 %v355_v5, 0.0  ;;  %1847 = vmatpush1.bf16.msra.mxu1 %v1846_v20  ;;  %v1876_v4 = vpack.c.bf16 %v962_v1, %v960_v2  ;;  %v959_v5 = vld [vmem:[#allocation8 + $0x100] sm:$0xff]  ;;  %v974_v19 = vld [vmem:[#allocation8 + $0x178] sm:$0xff]  ;;  %v1886_v20 = vpack.c.bf16 %v969_v18, %v967_v17 }
 0x16d   :  { %1849 = vmatprep.subr.bf16.mxu1 %v1848_v22  ;;  %v1888_v22 = vpack.c.bf16 %v974_v19, %v972_v33 }
 0x16e   :  { %619 = vmatprep.mubr.f32.mxu1 %v388_v6  ;;  %v961_v6 = vld [vmem:[#allocation8 + $0x110] sm:$0xff] }
 0x16f   :  { %620 = vmatmul.mubr.f32.gmra.mrb[30].mxu1 %v387_v7  ;;  %v964_v7 = vld [vmem:[#allocation8 + $0x128] sm:$0xff]  ;;  %v1878_v9 = vpack.c.bf16 %v961_v6, %v959_v5 }
 0x170   :  { %1851 = vmatpush1.bf16.msra.mxu1 %v1850_v27  ;;  %v1880_v10 = vpack.c.bf16 %v966_v8, %v964_v7  ;;  %v1890_v27 = vpack.c.bf16 %v973_v24, %v971_v23 }
 0x171   :  { %1853 = vmatprep.subr.bf16.mxu1 %v1852_v29  ;;  %v1892_v29 = vpack.c.bf16 %v978_v26, %v976_v25 }
 0x174   :  { %1855 = vmatpush1.bf16.msra.mxu1 %v1854_v37  ;;  %v1894_v37 = vpack.c.bf16 %v977_v34, %v975_v31 }
 0x175   :  { %1857 = vmatprep.subr.bf16.mxu1 %v1856_v38  ;;  %v1896_v38 = vpack.c.bf16 %v982_v36, %v980_v35 }
 0x178   :  { %1859 = vmatpush1.bf16.msra.mxu1 %v1858_v43  ;;  %v1898_v43 = vpack.c.bf16 %v981_v40, %v979_v39 }
 0x179   :  { %1861 = vmatprep.subr.bf16.mxu1 %v1860_v44  ;;  %v1900_v44 = vpack.c.bf16 %v986_v42, %v984_v41 }
 0x17c   :  { %1863 = vmatpush1.bf16.msra.mxu1 %v1862_v49  ;;  %v2453_v49 = vrot.slane %v453_v47, %v2403_v28 }
 0x17d   :  { %1865 = vmatprep.subr.bf16.mxu1 %v1864_v50  ;;  %v2456_v50 = vrot.slane %v453_v47, %v2409_v30 }
 0x180   :  { %1867 = vmatpush1.bf16.msra.mxu1 %v1866_v55 }
 0x181   :  { %1869 = vmatprep.subr.bf16.mxu1 %v1868_v56 }
 0x184   :  { %1871 = vmatpush1.bf16.msra.mxu1 %v1870_v61 }
 0x185   :  { %1873 = vmatprep.subr.bf16.mxu1 %v1872_v62 }
 0x188   :  { %1875 = vmatpush1.bf16.msra.mxu1 %v1874_v3 }
 0x189   :  { %1877 = vmatprep.subr.bf16.mxu1 %v1876_v4 }
 0x18c   :  { %1879 = vmatpush1.bf16.msra.mxu1 %v1878_v9 }
 0x18d   :  { %1881 = vmatprep.subr.bf16.mxu1 %v1880_v10 }
 0x190   :  { %1883 = vmatpush1.bf16.msra.mxu1 %v1882_v16 }
 0x191   :  { %1885 = vmatprep.subr.bf16.mxu1 %v1884_v32 }
 0x194   :  { %1887 = vmatpush1.bf16.msra.mxu1 %v1886_v20 }
 0x195   :  { %1889 = vmatprep.subr.bf16.mxu1 %v1888_v22 }
 0x198   :  { %1891 = vmatpush1.bf16.msra.mxu1 %v1890_v27 }
 0x199   :  { %1893 = vmatprep.subr.bf16.mxu1 %v1892_v29 }
 0x19c   :  { %1895 = vmatpush1.bf16.msra.mxu1 %v1894_v37 }
 0x19d   :  { %1897 = vmatprep.subr.bf16.mxu1 %v1896_v38 }
 0x1a0   :  { %1899 = vmatpush1.bf16.msra.mxu1 %v1898_v43 }
 0x1a1   :  { %1901 = vmatprep.subr.bf16.mxu1 %v1900_v44 }
 0x1a4   :  { %1903 = vmatpush1.bf16.msra.mxu1 %v1902_v48 }
 0x206   :  { %v531_v51 = vpop.f32.mrb[0].mxu1 }
 0x207   :  { %v532_v52 = vadd.f32 %v531_v51, %v2453_v49  ;;  %v533_v53 = vpop.f32.mrb[1].mxu1 }
 0x208   :  { %v534_v54 = vadd.f32 %v533_v53, %v2456_v50 }
 0x209   :  { %v626_v57 = vmax.f32 %v532_v52, 0.0 }
 0x20a   :  { %v627_v55 = vmax.f32 %v534_v54, 0.0  ;;  %v537_v56 = vpop.f32.mrb[2].mxu1 }
 0x20b   :  { %v538_v58 = vadd.f32 %v537_v56, %v2453_v49  ;;  %v539_v59 = vpop.f32.mrb[3].mxu1 }
 0x20c   :  { %v540_v60 = vadd.f32 %v539_v59, %v2456_v50  ;;  %798 = vmatprep.mubr.f32.mxu0 %v627_v55 }
 0x20d   :  { %799 = vmatmul.mubr.f32.vlgmr.msra.gmra.mrb[32].mxu0 %v626_v57  ;;  %v628_v63 = vmax.f32 %v538_v58, 0.0 }
 0x20e   :  { %v629_v61 = vmax.f32 %v540_v60, 0.0  ;;  %v543_v62 = vpop.f32.mrb[4].mxu1 }
 0x20f   :  { %v544_v0 = vadd.f32 %v543_v62, %v2453_v49  ;;  %v545_v2 = vpop.f32.mrb[5].mxu1 }
 0x210   :  { %v546_v1 = vadd.f32 %v545_v2, %v2456_v50  ;;  %804 = vmatprep.mubr.f32.mxu0 %v629_v61 }
 0x211   :  { %805 = vmatmul.mubr.f32.gmra.mrb[34].mxu0 %v628_v63  ;;  %v630_v5 = vmax.f32 %v544_v0, 0.0 }
 0x212   :  { %v631_v3 = vmax.f32 %v546_v1, 0.0  ;;  %v549_v4 = vpop.f32.mrb[6].mxu1 }
 0x213   :  { %v550_v6 = vadd.f32 %v549_v4, %v2453_v49  ;;  %v551_v7 = vpop.f32.mrb[7].mxu1 }
 0x214   :  { %v552_v8 = vadd.f32 %v551_v7, %v2456_v50  ;;  %810 = vmatprep.mubr.f32.mxu0 %v631_v3 }
 0x215   :  { %811 = vmatmul.mubr.f32.gmra.mrb[36].mxu0 %v630_v5  ;;  %v632_v11 = vmax.f32 %v550_v6, 0.0 }
 0x216   :  { %v633_v9 = vmax.f32 %v552_v8, 0.0  ;;  %v555_v10 = vpop.f32.mrb[8].mxu1 }
 0x217   :  { %v556_v12 = vadd.f32 %v555_v10, %v2453_v49  ;;  %v557_v13 = vpop.f32.mrb[9].mxu1 }
 0x218   :  { %v558_v15 = vadd.f32 %v557_v13, %v2456_v50  ;;  %816 = vmatprep.mubr.f32.mxu0 %v633_v9 }
 0x219   :  { %817 = vmatmul.mubr.f32.gmra.mrb[38].mxu0 %v632_v11  ;;  %v634_v17 = vmax.f32 %v556_v12, 0.0 }
 0x21a   :  { %v635_v16 = vmax.f32 %v558_v15, 0.0  ;;  %v561_v32 = vpop.f32.mrb[10].mxu1 }
 0x21b   :  { %v562_v18 = vadd.f32 %v561_v32, %v2453_v49  ;;  %v563_v33 = vpop.f32.mrb[11].mxu1 }
 0x21c   :  { %v564_v19 = vadd.f32 %v563_v33, %v2456_v50  ;;  %822 = vmatprep.mubr.f32.mxu0 %v635_v16 }
 0x21d   :  { %823 = vmatmul.mubr.f32.gmra.mrb[40].mxu0 %v634_v17  ;;  %v636_v23 = vmax.f32 %v562_v18, 0.0 }
 0x21e   :  { %v637_v20 = vmax.f32 %v564_v19, 0.0  ;;  %v567_v22 = vpop.f32.mrb[12].mxu1 }
 0x21f   :  { %v568_v24 = vadd.f32 %v567_v22, %v2453_v49  ;;  %v569_v25 = vpop.f32.mrb[13].mxu1 }
 0x220   :  { %v570_v26 = vadd.f32 %v569_v25, %v2456_v50  ;;  %828 = vmatprep.mubr.f32.mxu0 %v637_v20  ;;  %v988_v25 = vld [vmem:[#allocation8 + $0x1e8] sm:$0xff] }
 0x221   :  { %829 = vmatmul.mubr.f32.gmra.mrb[42].mxu0 %v636_v23  ;;  %v638_v31 = vmax.f32 %v568_v24, 0.0 }
 0x222   :  { %v639_v27 = vmax.f32 %v570_v26, 0.0  ;;  %v573_v29 = vpop.f32.mrb[14].mxu1  ;;  %v990_v26 = vld [vmem:[#allocation8 + $0x1f8] sm:$0xff] }
 0x223   :  { %v574_v34 = vadd.f32 %v573_v29, %v2453_v49  ;;  %v575_v35 = vpop.f32.mrb[15].mxu1  ;;  %v987_v29 = vld [vmem:[#allocation8 + $0x1e0] sm:$0xff] }
 0x224   :  { %v576_v36 = vadd.f32 %v575_v35, %v2456_v50  ;;  %834 = vmatprep.mubr.f32.mxu0 %v639_v27  ;;  %v1904_v27 = vpack.c.bf16 %v990_v26, %v988_v25  ;;  %v1197_v35 = vld [vmem:[#allocation9 + $0x8] sm:$0xff]  ;;  %v1235_v25 = vld [vmem:[#allocation9 + $0x138] sm:$0xff] }
 0x225   :  { %835 = vmatmul.mubr.f32.gmra.mrb[44].mxu0 %v638_v31  ;;  %v640_v39 = vmax.f32 %v574_v34, 0.0  ;;  %v989_v31 = vld [vmem:[#allocation8 + $0x1f0] sm:$0xff] }
 0x226   :  { %v641_v37 = vmax.f32 %v576_v36, 0.0  ;;  %v579_v38 = vpop.f32.mrb[16].mxu1  ;;  %v1906_v34 = vpack.c.bf16 %v989_v31, %v987_v29  ;;  %1905 = vmatprep.subr.bf16.mxu1 %v1904_v27  ;;  %v1199_v36 = vld [vmem:[#allocation9 + $0x18] sm:$0xff]  ;;  %v1232_v29 = vld [vmem:[#allocation9 + $0x120] sm:$0xff]  ;;  %v1234_v31 = vld [vmem:[#allocation9 + $0x130] sm:$0xff] }
 0x227   :  { %v580_v40 = vadd.f32 %v579_v38, %v2453_v49  ;;  %v581_v41 = vpop.f32.mrb[17].mxu1  ;;  %v1198_v38 = vld [vmem:[#allocation9 + $0x10] sm:$0xff] }
 0x228   :  { %v582_v42 = vadd.f32 %v581_v41, %v2456_v50  ;;  %840 = vmatprep.mubr.f32.mxu0 %v641_v37  ;;  %1907 = vmatpush1.bf16.msra.mxu1 %v1906_v34  ;;  %v1908_v37 = vpack.c.bf16 %v1199_v36, %v1197_v35  ;;  %v1237_v34 = vld [vmem:[#allocation9 + $0x148] sm:$0xff]  ;;  %v1239_v35 = vld [vmem:[#allocation9 + $0x158] sm:$0xff]  ;;  %v2543_v36 = vpack.c.bf16 %v1234_v31, %v1232_v29 }
 0x229   :  { %841 = vmatmul.mubr.f32.gmra.mrb[46].mxu0 %v640_v39  ;;  %v642_v45 = vmax.f32 %v580_v40, 0.0  ;;  %v1203_v39 = vld [vmem:[#allocation9 + $0x38] sm:$0xff] }
 0x22a   :  { %v643_v43 = vmax.f32 %v582_v42, 0.0  ;;  %v585_v44 = vpop.f32.mrb[18].mxu1  ;;  %v1200_v42 = vld [vmem:[#allocation9 + $0x20] sm:$0xff]  ;;  %1909 = vmatprep.subr.bf16.mxu0 %v1908_v37  ;;  %1972 = vmatprep.subr.bf16.mxu1 %v1908_v37 }
 0x22b   :  { %v586_v46 = vadd.f32 %v585_v44, %v2453_v49  ;;  %v587_v47 = vpop.f32.mrb[19].mxu1  ;;  %v1205_v44 = vld [vmem:[#allocation9 + $0x48] sm:$0xff]  ;;  %v1236_v37 = vld [vmem:[#allocation9 + $0x140] sm:$0xff] }
 0x22c   :  { %v588_v48 = vadd.f32 %v587_v47, %v2456_v50  ;;  %846 = vmatprep.mubr.f32.mxu0 %v643_v43  ;;  %v1202_v43 = vld [vmem:[#allocation9 + $0x30] sm:$0xff] }
 0x22d   :  { %847 = vmatmul.mubr.f32.gmra.mrb[48].mxu0 %v642_v45  ;;  %v644_v53 = vmax.f32 %v586_v46, 0.0  ;;  %v1207_v45 = vld [vmem:[#allocation9 + $0x58] sm:$0xff]  ;;  %v2495_v46 = vpack.c.bf16 %v1202_v43, %v1200_v42 }
 0x22e   :  { %v645_v51 = vmax.f32 %v588_v48, 0.0  ;;  %v591_v52 = vpop.f32.mrb[20].mxu1  ;;  %v2498_v47 = vpack.c.bf16 %v1207_v45, %v1205_v44  ;;  %v1204_v48 = vld [vmem:[#allocation9 + $0x40] sm:$0xff]  ;;  %v1242_v45 = vld [vmem:[#allocation9 + $0x170] sm:$0xff] }
 0x22f   :  { %v592_v54 = vadd.f32 %v591_v52, %v2453_v49  ;;  %v593_v55 = vpop.f32.mrb[21].mxu1  ;;  %v1209_v52 = vld [vmem:[#allocation9 + $0x68] sm:$0xff]  ;;  %v1240_v44 = vld [vmem:[#allocation9 + $0x160] sm:$0xff] }
 0x230   :  { %v594_v56 = vadd.f32 %v593_v55, %v2456_v50  ;;  %852 = vmatprep.mubr.f32.mxu0 %v645_v51  ;;  %v1206_v51 = vld [vmem:[#allocation9 + $0x50] sm:$0xff] }
 0x231   :  { %853 = vmatmul.mubr.f32.gmra.mrb[50].mxu0 %v644_v53  ;;  %v646_v59 = vmax.f32 %v592_v54, 0.0  ;;  %v1211_v53 = vld [vmem:[#allocation9 + $0x78] sm:$0xff]  ;;  %v2501_v54 = vpack.c.bf16 %v1206_v51, %v1204_v48  ;;  %v1245_v48 = vld [vmem:[#allocation9 + $0x188] sm:$0xff] }
 0x232   :  { %v647_v57 = vmax.f32 %v594_v56, 0.0  ;;  %v597_v58 = vpop.f32.mrb[22].mxu1  ;;  %v2504_v55 = vpack.c.bf16 %v1211_v53, %v1209_v52  ;;  %v1208_v56 = vld [vmem:[#allocation9 + $0x60] sm:$0xff]  ;;  %v1247_v51 = vld [vmem:[#allocation9 + $0x198] sm:$0xff]  ;;  %v2555_v52 = vpack.c.bf16 %v1242_v45, %v1240_v44 }
 0x233   :  { %v598_v60 = vadd.f32 %v597_v58, %v2453_v49  ;;  %v599_v61 = vpop.f32.mrb[23].mxu1  ;;  %v1213_v58 = vld [vmem:[#allocation9 + $0x88] sm:$0xff]  ;;  %v2558_v53 = vpack.c.bf16 %v1247_v51, %v1245_v48 }
 0x234   :  { %v600_v62 = vadd.f32 %v599_v61, %v2456_v50  ;;  %858 = vmatprep.mubr.f32.mxu0 %v647_v57  ;;  %v1210_v57 = vld [vmem:[#allocation9 + $0x70] sm:$0xff] }
 0x235   :  { %859 = vmatmul.mubr.f32.gmra.mrb[52].mxu0 %v646_v59  ;;  %v648_v2 = vmax.f32 %v598_v60, 0.0  ;;  %v1215_v59 = vld [vmem:[#allocation9 + $0x98] sm:$0xff]  ;;  %v2507_v60 = vpack.c.bf16 %v1210_v57, %v1208_v56  ;;  %v1244_v56 = vld [vmem:[#allocation9 + $0x180] sm:$0xff]  ;;  %v1246_v57 = vld [vmem:[#allocation9 + $0x190] sm:$0xff] }
 0x236   :  { %v649_v63 = vmax.f32 %v600_v62, 0.0  ;;  %v603_v0 = vpop.f32.mrb[24].mxu1  ;;  %v2510_v61 = vpack.c.bf16 %v1215_v59, %v1213_v58  ;;  %v1212_v62 = vld [vmem:[#allocation9 + $0x80] sm:$0xff]  ;;  %v1249_v58 = vld [vmem:[#allocation9 + $0x1a8] sm:$0xff]  ;;  %v1251_v59 = vld [vmem:[#allocation9 + $0x1b8] sm:$0xff] }
 0x237   :  { %v604_v1 = vadd.f32 %v603_v0, %v2453_v49  ;;  %v605_v3 = vpop.f32.mrb[25].mxu1  ;;  %v1217_v0 = vld [vmem:[#allocation9 + $0xa8] sm:$0xff] }
 0x238   :  { %v606_v4 = vadd.f32 %v605_v3, %v2456_v50  ;;  %864 = vmatprep.mubr.f32.mxu0 %v649_v63  ;;  %v1214_v63 = vld [vmem:[#allocation9 + $0x90] sm:$0xff] }
 0x239   :  { %865 = vmatmul.mubr.f32.gmra.mrb[54].mxu0 %v648_v2  ;;  %v650_v7 = vmax.f32 %v604_v1, 0.0  ;;  %v1219_v2 = vld [vmem:[#allocation9 + $0xb8] sm:$0xff]  ;;  %v2513_v1 = vpack.c.bf16 %v1214_v63, %v1212_v62  ;;  %v2561_v62 = vpack.c.bf16 %v1246_v57, %v1244_v56  ;;  %v2564_v63 = vpack.c.bf16 %v1251_v59, %v1249_v58 }
 0x23a   :  { %v651_v5 = vmax.f32 %v606_v4, 0.0  ;;  %v609_v6 = vpop.f32.mrb[26].mxu1  ;;  %v2516_v3 = vpack.c.bf16 %v1219_v2, %v1217_v0  ;;  %v1216_v4 = vld [vmem:[#allocation9 + $0xa0] sm:$0xff]  ;;  %v1250_v2 = vld [vmem:[#allocation9 + $0x1b0] sm:$0xff] }
 0x23b   :  { %v610_v8 = vadd.f32 %v609_v6, %v2453_v49  ;;  %v611_v9 = vpop.f32.mrb[27].mxu1  ;;  %v1221_v6 = vld [vmem:[#allocation9 + $0xc8] sm:$0xff]  ;;  %v1248_v0 = vld [vmem:[#allocation9 + $0x1a0] sm:$0xff] }
 0x23c   :  { %v612_v10 = vadd.f32 %v611_v9, %v2456_v50  ;;  %870 = vmatprep.mubr.f32.mxu0 %v651_v5  ;;  %v1218_v5 = vld [vmem:[#allocation9 + $0xb0] sm:$0xff] }
 0x23d   :  { %871 = vmatmul.mubr.f32.gmra.mrb[56].mxu0 %v650_v7  ;;  %v652_v13 = vmax.f32 %v610_v8, 0.0  ;;  %v1223_v7 = vld [vmem:[#allocation9 + $0xd8] sm:$0xff]  ;;  %v2519_v8 = vpack.c.bf16 %v1218_v5, %v1216_v4  ;;  %v1253_v4 = vld [vmem:[#allocation9 + $0x1c8] sm:$0xff] }
 0x23e   :  { %v653_v11 = vmax.f32 %v612_v10, 0.0  ;;  %v615_v12 = vpop.f32.mrb[28].mxu1  ;;  %v2522_v9 = vpack.c.bf16 %v1223_v7, %v1221_v6  ;;  %v1220_v10 = vld [vmem:[#allocation9 + $0xc0] sm:$0xff]  ;;  %v1255_v5 = vld [vmem:[#allocation9 + $0x1d8] sm:$0xff]  ;;  %v2567_v6 = vpack.c.bf16 %v1250_v2, %v1248_v0 }
 0x23f   :  { %v616_v15 = vadd.f32 %v615_v12, %v2453_v49  ;;  %v617_v16 = vpop.f32.mrb[29].mxu1  ;;  %v1225_v12 = vld [vmem:[#allocation9 + $0xe8] sm:$0xff]  ;;  %v2570_v7 = vpack.c.bf16 %v1255_v5, %v1253_v4 }
 0x240   :  { %v618_v32 = vadd.f32 %v617_v16, %v2456_v50  ;;  %876 = vmatprep.mubr.f32.mxu0 %v653_v11  ;;  %v1222_v11 = vld [vmem:[#allocation9 + $0xd0] sm:$0xff] }
 0x241   :  { %877 = vmatmul.mubr.f32.gmra.mrb[58].mxu0 %v652_v13  ;;  %v654_v33 = vmax.f32 %v616_v15, 0.0  ;;  %v1227_v13 = vld [vmem:[#allocation9 + $0xf8] sm:$0xff]  ;;  %v2525_v15 = vpack.c.bf16 %v1222_v11, %v1220_v10 }
 0x242   :  { %v655_v17 = vmax.f32 %v618_v32, 0.0  ;;  %v621_v18 = vpop.f32.mrb[30].mxu1  ;;  %v2528_v16 = vpack.c.bf16 %v1227_v13, %v1225_v12  ;;  %v1224_v32 = vld [vmem:[#allocation9 + $0xe0] sm:$0xff] }
 0x243   :  { %v622_v19 = vadd.f32 %v621_v18, %v2453_v49  ;;  %v623_v20 = vpop.f32.mrb[31].mxu1  ;;  %v1196_v49 = vld [vmem:[#allocation9] sm:$0xff]  ;;  %v1229_v18 = vld [vmem:[#allocation9 + $0x108] sm:$0xff] }
 0x244   :  { %v624_v22 = vadd.f32 %v623_v20, %v2456_v50  ;;  %882 = vmatprep.mubr.f32.mxu0 %v655_v17  ;;  %v1201_v50 = vld [vmem:[#allocation9 + $0x28] sm:$0xff]  ;;  %v2490_v40 = vpack.c.bf16 %v1198_v38, %v1196_v49  ;;  %v1226_v17 = vld [vmem:[#allocation9 + $0xf0] sm:$0xff]  ;;  %v2546_v49 = vpack.c.bf16 %v1239_v35, %v1237_v34  ;;  %v722_v10 = vld [vmem:[%s2845_s6] sm:$0x3] }
 0x245   :  { %883 = vmatmul.mubr.f32.gmra.mrb[60].mxu0 %v654_v33  ;;  %v656_v24 = vmax.f32 %v622_v19, 0.0  ;;  %v2492_v41 = vpack.c.bf16 %v1203_v39, %v1201_v50  ;;  %v1231_v33 = vld [vmem:[#allocation9 + $0x118] sm:$0xff]  ;;  %v2531_v19 = vpack.c.bf16 %v1226_v17, %v1224_v32  ;;  %v1238_v38 = vld [vmem:[#allocation9 + $0x150] sm:$0xff]  ;;  %v1241_v50 = vld [vmem:[#allocation9 + $0x168] sm:$0xff]  ;;  %v2578_v11 = vrot.slane %v722_v10, %v2403_v28 }
 0x246   :  { %v657_v23 = vmax.f32 %v624_v22, 0.0  ;;  %1911 = vmatpush1.bf16.msra.mxu0 %v2490_v40  ;;  %v2534_v20 = vpack.c.bf16 %v1231_v33, %v1229_v18  ;;  %v1228_v22 = vld [vmem:[#allocation9 + $0x100] sm:$0xff]  ;;  %v1243_v39 = vld [vmem:[#allocation9 + $0x178] sm:$0xff]  ;;  %v2549_v42 = vpack.c.bf16 %v1238_v38, %v1236_v37  ;;  %v2581_v12 = vrot.slane %v722_v10, %v2409_v30 }
 0x247   :  { %1913 = vmatprep.subr.bf16.mxu0 %v2492_v41  ;;  %v2552_v43 = vpack.c.bf16 %v1243_v39, %v1241_v50 }
 0x248   :  { %888 = vmatprep.mubr.f32.mxu0 %v657_v23  ;;  %v1230_v23 = vld [vmem:[#allocation9 + $0x110] sm:$0xff] }
 0x249   :  { %889 = vmatmul.mubr.f32.gmra.mrb[62].mxu0 %v656_v24  ;;  %v1233_v24 = vld [vmem:[#allocation9 + $0x128] sm:$0xff]  ;;  %v2537_v26 = vpack.c.bf16 %v1230_v23, %v1228_v22 }
 0x24a   :  { %1915 = vmatpush1.bf16.msra.mxu0 %v2495_v46  ;;  %v2540_v27 = vpack.c.bf16 %v1235_v25, %v1233_v24 }
 0x24b   :  { %1917 = vmatprep.subr.bf16.mxu0 %v2498_v47 }
 0x24e   :  { %1919 = vmatpush1.bf16.msra.mxu0 %v2501_v54 }
 0x24f   :  { %1921 = vmatprep.subr.bf16.mxu0 %v2504_v55 }
 0x252   :  { %1923 = vmatpush1.bf16.msra.mxu0 %v2507_v60 }
 0x253   :  { %1925 = vmatprep.subr.bf16.mxu0 %v2510_v61 }
 0x256   :  { %1927 = vmatpush1.bf16.msra.mxu0 %v2513_v1 }
 0x257   :  { %1929 = vmatprep.subr.bf16.mxu0 %v2516_v3 }
 0x25a   :  { %1931 = vmatpush1.bf16.msra.mxu0 %v2519_v8 }
 0x25b   :  { %1933 = vmatprep.subr.bf16.mxu0 %v2522_v9 }
 0x25e   :  { %1935 = vmatpush1.bf16.msra.mxu0 %v2525_v15 }
 0x25f   :  { %1937 = vmatprep.subr.bf16.mxu0 %v2528_v16 }
 0x262   :  { %1939 = vmatpush1.bf16.msra.mxu0 %v2531_v19 }
 0x263   :  { %1941 = vmatprep.subr.bf16.mxu0 %v2534_v20 }
 0x266   :  { %1943 = vmatpush1.bf16.msra.mxu0 %v2537_v26 }
 0x267   :  { %1945 = vmatprep.subr.bf16.mxu0 %v2540_v27 }
 0x26a   :  { %1947 = vmatpush1.bf16.msra.mxu0 %v2543_v36 }
 0x26b   :  { %1949 = vmatprep.subr.bf16.mxu0 %v2546_v49 }
 0x26e   :  { %1951 = vmatpush1.bf16.msra.mxu0 %v2549_v42 }
 0x26f   :  { %1953 = vmatprep.subr.bf16.mxu0 %v2552_v43 }
 0x272   :  { %1955 = vmatpush1.bf16.msra.mxu0 %v2555_v52 }
 0x273   :  { %1957 = vmatprep.subr.bf16.mxu0 %v2558_v53 }
 0x276   :  { %1959 = vmatpush1.bf16.msra.mxu0 %v2561_v62 }
 0x277   :  { %1961 = vmatprep.subr.bf16.mxu0 %v2564_v63 }
 0x27a   :  { %1963 = vmatpush1.bf16.msra.mxu0 %v2567_v6 }
 0x27b   :  { %1965 = vmatprep.subr.bf16.mxu0 %v2570_v7 }
 0x2e0   :  { %v800_v13 = vpop.f32.mrb[32].mxu0 }
 0x2e1   :  { %v801_v32 = vadd.f32 %v800_v13, %v2578_v11  ;;  %v802_v17 = vpop.f32.mrb[33].mxu0 }
 0x2e2   :  { %v803_v18 = vadd.f32 %v802_v17, %v2581_v12 }
 0x2e3   :  { %v895_v23 = vmax.f32 %v801_v32, 0.0 }
 0x2e4   :  { %v896_v33 = vmax.f32 %v803_v18, 0.0  ;;  %v806_v22 = vpop.f32.mrb[34].mxu0 }
 0x2e5   :  { %v807_v24 = vadd.f32 %v806_v22, %v2578_v11  ;;  %v808_v25 = vpop.f32.mrb[35].mxu0 }
 0x2e6   :  { %v809_v29 = vadd.f32 %v808_v25, %v2581_v12  ;;  %1067 = vmatprep.mubr.f32.mxu1 %v896_v33 }
 0x2e7   :  { %1068 = vmatmul.mubr.f32.vlgmr.msra.gmra.mrb[32].mxu1 %v895_v23  ;;  %v897_v35 = vmax.f32 %v807_v24, 0.0 }
 0x2e8   :  { %v898_v31 = vmax.f32 %v809_v29, 0.0  ;;  %v812_v34 = vpop.f32.mrb[36].mxu0  ;;  %1988 = vmatpush1.bf16.msra.mxu1 %v2490_v40 }
 0x2e9   :  { %v813_v37 = vadd.f32 %v812_v34, %v2578_v11  ;;  %v814_v38 = vpop.f32.mrb[37].mxu0  ;;  %1973 = vmatprep.subr.bf16.mxu1 %v2492_v41 }
 0x2ea   :  { %v815_v50 = vadd.f32 %v814_v38, %v2581_v12  ;;  %1073 = vmatprep.mubr.f32.mxu1 %v898_v31 }
 0x2eb   :  { %1074 = vmatmul.mubr.f32.gmra.mrb[34].mxu1 %v897_v35  ;;  %v899_v45 = vmax.f32 %v813_v37, 0.0 }
 0x2ec   :  { %v900_v39 = vmax.f32 %v815_v50, 0.0  ;;  %v818_v44 = vpop.f32.mrb[38].mxu0  ;;  %1989 = vmatpush1.bf16.msra.mxu1 %v2495_v46 }
 0x2ed   :  { %v819_v48 = vadd.f32 %v818_v44, %v2578_v11  ;;  %v820_v51 = vpop.f32.mrb[39].mxu0  ;;  %1974 = vmatprep.subr.bf16.mxu1 %v2498_v47 }
 0x2ee   :  { %v821_v40 = vadd.f32 %v820_v51, %v2581_v12  ;;  %1079 = vmatprep.mubr.f32.mxu1 %v900_v39 }
 0x2ef   :  { %1080 = vmatmul.mubr.f32.gmra.mrb[36].mxu1 %v899_v45  ;;  %v901_v57 = vmax.f32 %v819_v48, 0.0 }
 0x2f0   :  { %v902_v56 = vmax.f32 %v821_v40, 0.0  ;;  %v824_v41 = vpop.f32.mrb[40].mxu0  ;;  %1990 = vmatpush1.bf16.msra.mxu1 %v2501_v54 }
 0x2f1   :  { %v825_v58 = vadd.f32 %v824_v41, %v2578_v11  ;;  %v826_v59 = vpop.f32.mrb[41].mxu0  ;;  %1975 = vmatprep.subr.bf16.mxu1 %v2504_v55 }
 0x2f2   :  { %v827_v46 = vadd.f32 %v826_v59, %v2581_v12  ;;  %1085 = vmatprep.mubr.f32.mxu1 %v902_v56 }
 0x2f3   :  { %1086 = vmatmul.mubr.f32.gmra.mrb[38].mxu1 %v901_v57  ;;  %v903_v2 = vmax.f32 %v825_v58, 0.0 }
 0x2f4   :  { %v904_v0 = vmax.f32 %v827_v46, 0.0  ;;  %v830_v47 = vpop.f32.mrb[42].mxu0  ;;  %1991 = vmatpush1.bf16.msra.mxu1 %v2507_v60 }
 0x2f5   :  { %v831_v4 = vadd.f32 %v830_v47, %v2578_v11  ;;  %v832_v5 = vpop.f32.mrb[43].mxu0  ;;  %1976 = vmatprep.subr.bf16.mxu1 %v2510_v61 }
 0x2f6   :  { %v833_v54 = vadd.f32 %v832_v5, %v2581_v12  ;;  %1091 = vmatprep.mubr.f32.mxu1 %v904_v0 }
 0x2f7   :  { %1092 = vmatmul.mubr.f32.gmra.mrb[40].mxu1 %v903_v2  ;;  %v905_v13 = vmax.f32 %v831_v4, 0.0 }
 0x2f8   :  { %v906_v10 = vmax.f32 %v833_v54, 0.0  ;;  %v836_v55 = vpop.f32.mrb[44].mxu0  ;;  %1992 = vmatpush1.bf16.msra.mxu1 %v2513_v1 }
 0x2f9   :  { %v837_v32 = vadd.f32 %v836_v55, %v2578_v11  ;;  %v838_v17 = vpop.f32.mrb[45].mxu0  ;;  %1977 = vmatprep.subr.bf16.mxu1 %v2516_v3 }
 0x2fa   :  { %v839_v60 = vadd.f32 %v838_v17, %v2581_v12  ;;  %1097 = vmatprep.mubr.f32.mxu1 %v906_v10 }
 0x2fb   :  { %1098 = vmatmul.mubr.f32.gmra.mrb[42].mxu1 %v905_v13  ;;  %v907_v33 = vmax.f32 %v837_v32, 0.0 }
 0x2fc   :  { %v908_v18 = vmax.f32 %v839_v60, 0.0  ;;  %v842_v61 = vpop.f32.mrb[46].mxu0  ;;  %1993 = vmatpush1.bf16.msra.mxu1 %v2519_v8 }
 0x2fd   :  { %v843_v22 = vadd.f32 %v842_v61, %v2578_v11  ;;  %v844_v23 = vpop.f32.mrb[47].mxu0  ;;  %1978 = vmatprep.subr.bf16.mxu1 %v2522_v9  ;;  %v1254_v61 = vld [vmem:[#allocation9 + $0x1d0] sm:$0xff] }
 0x2fe   :  { %v845_v1 = vadd.f32 %v844_v23, %v2581_v12  ;;  %1103 = vmatprep.mubr.f32.mxu1 %v908_v18  ;;  %v1252_v18 = vld [vmem:[#allocation9 + $0x1c0] sm:$0xff] }
 0x2ff   :  { %1104 = vmatmul.mubr.f32.gmra.mrb[44].mxu1 %v907_v33  ;;  %v909_v25 = vmax.f32 %v843_v22, 0.0  ;;  %v1966_v33 = vpack.c.bf16 %v1254_v61, %v1252_v18  ;;  %v1257_v22 = vld [vmem:[#allocation9 + $0x1e8] sm:$0xff] }
 0x300   :  { %v910_v24 = vmax.f32 %v845_v1, 0.0  ;;  %v848_v3 = vpop.f32.mrb[48].mxu0  ;;  %1994 = vmatpush1.bf16.msra.mxu1 %v2525_v15  ;;  %v1258_v1 = vld [vmem:[#allocation9 + $0x1f0] sm:$0xff] }
 0x301   :  { %v849_v29 = vadd.f32 %v848_v3, %v2578_v11  ;;  %v850_v31 = vpop.f32.mrb[49].mxu0  ;;  %1979 = vmatprep.subr.bf16.mxu1 %v2528_v16  ;;  %1967 = vmatpush1.bf16.msra.mxu0 %v1966_v33 }
 0x302   :  { %v851_v8 = vadd.f32 %v850_v31, %v2581_v12  ;;  %1109 = vmatprep.mubr.f32.mxu1 %v910_v24 }
 0x303   :  { %1110 = vmatmul.mubr.f32.gmra.mrb[46].mxu1 %v909_v25  ;;  %v911_v35 = vmax.f32 %v849_v29, 0.0 }
 0x304   :  { %v912_v34 = vmax.f32 %v851_v8, 0.0  ;;  %v854_v9 = vpop.f32.mrb[50].mxu0  ;;  %1995 = vmatpush1.bf16.msra.mxu1 %v2531_v19 }
 0x305   :  { %v855_v37 = vadd.f32 %v854_v9, %v2578_v11  ;;  %v856_v38 = vpop.f32.mrb[51].mxu0  ;;  %1980 = vmatprep.subr.bf16.mxu1 %v2534_v20 }
 0x306   :  { %v857_v15 = vadd.f32 %v856_v38, %v2581_v12  ;;  %1115 = vmatprep.mubr.f32.mxu1 %v912_v34 }
 0x307   :  { %1116 = vmatmul.mubr.f32.gmra.mrb[48].mxu1 %v911_v35  ;;  %v913_v39 = vmax.f32 %v855_v37, 0.0 }
 0x308   :  { %v914_v50 = vmax.f32 %v857_v15, 0.0  ;;  %v860_v16 = vpop.f32.mrb[52].mxu0  ;;  %1996 = vmatpush1.bf16.msra.mxu1 %v2537_v26 }
 0x309   :  { %v861_v44 = vadd.f32 %v860_v16, %v2578_v11  ;;  %v862_v45 = vpop.f32.mrb[53].mxu0  ;;  %1981 = vmatprep.subr.bf16.mxu1 %v2540_v27 }
 0x30a   :  { %v863_v19 = vadd.f32 %v862_v45, %v2581_v12  ;;  %1121 = vmatprep.mubr.f32.mxu1 %v914_v50 }
 0x30b   :  { %1122 = vmatmul.mubr.f32.gmra.mrb[50].mxu1 %v913_v39  ;;  %v915_v51 = vmax.f32 %v861_v44, 0.0 }
 0x30c   :  { %v916_v48 = vmax.f32 %v863_v19, 0.0  ;;  %v866_v20 = vpop.f32.mrb[54].mxu0  ;;  %1997 = vmatpush1.bf16.msra.mxu1 %v2543_v36 }
 0x30d   :  { %v867_v40 = vadd.f32 %v866_v20, %v2578_v11  ;;  %v868_v56 = vpop.f32.mrb[55].mxu0  ;;  %1982 = vmatprep.subr.bf16.mxu1 %v2546_v49 }
 0x30e   :  { %v869_v26 = vadd.f32 %v868_v56, %v2581_v12  ;;  %1127 = vmatprep.mubr.f32.mxu1 %v916_v48 }
 0x30f   :  { %1128 = vmatmul.mubr.f32.gmra.mrb[52].mxu1 %v915_v51  ;;  %v917_v57 = vmax.f32 %v867_v40, 0.0 }
 0x310   :  { %v918_v41 = vmax.f32 %v869_v26, 0.0  ;;  %v872_v27 = vpop.f32.mrb[56].mxu0  ;;  %1998 = vmatpush1.bf16.msra.mxu1 %v2549_v42 }
 0x311   :  { %v873_v58 = vadd.f32 %v872_v27, %v2578_v11  ;;  %v874_v59 = vpop.f32.mrb[57].mxu0  ;;  %1983 = vmatprep.subr.bf16.mxu1 %v2552_v43 }
 0x312   :  { %v875_v36 = vadd.f32 %v874_v59, %v2581_v12  ;;  %1133 = vmatprep.mubr.f32.mxu1 %v918_v41 }
 0x313   :  { %1134 = vmatmul.mubr.f32.gmra.mrb[54].mxu1 %v917_v57  ;;  %v919_v0 = vmax.f32 %v873_v58, 0.0 }
 0x314   :  { %v920_v46 = vmax.f32 %v875_v36, 0.0  ;;  %v878_v49 = vpop.f32.mrb[58].mxu0  ;;  %1999 = vmatpush1.bf16.msra.mxu1 %v2555_v52 }
 0x315   :  { %v879_v47 = vadd.f32 %v878_v49, %v2578_v11  ;;  %v880_v2 = vpop.f32.mrb[59].mxu0  ;;  %1984 = vmatprep.subr.bf16.mxu1 %v2558_v53 }
 0x316   :  { %v881_v42 = vadd.f32 %v880_v2, %v2581_v12  ;;  %1139 = vmatprep.mubr.f32.mxu1 %v920_v46 }
 0x317   :  { %1140 = vmatmul.mubr.f32.gmra.mrb[56].mxu1 %v919_v0  ;;  %v921_v5 = vmax.f32 %v879_v47, 0.0 }
 0x318   :  { %v922_v4 = vmax.f32 %v881_v42, 0.0  ;;  %v884_v43 = vpop.f32.mrb[60].mxu0  ;;  %2000 = vmatpush1.bf16.msra.mxu1 %v2561_v62 }
 0x319   :  { %v885_v54 = vadd.f32 %v884_v43, %v2578_v11  ;;  %v886_v10 = vpop.f32.mrb[61].mxu0  ;;  %1985 = vmatprep.subr.bf16.mxu1 %v2564_v63 }
 0x31a   :  { %v887_v52 = vadd.f32 %v886_v10, %v2581_v12  ;;  %1145 = vmatprep.mubr.f32.mxu1 %v922_v4 }
 0x31b   :  { %1146 = vmatmul.mubr.f32.gmra.mrb[58].mxu1 %v921_v5  ;;  %v923_v13 = vmax.f32 %v885_v54, 0.0 }
 0x31c   :  { %v924_v55 = vmax.f32 %v887_v52, 0.0  ;;  %v890_v53 = vpop.f32.mrb[62].mxu0  ;;  %2001 = vmatpush1.bf16.msra.mxu1 %v2567_v6  ;;  %v1259_v6 = vld [vmem:[#allocation9 + $0x1f8] sm:$0xff] }
 0x31d   :  { %v891_v32 = vadd.f32 %v890_v53, %v2578_v11  ;;  %v892_v17 = vpop.f32.mrb[63].mxu0  ;;  %1986 = vmatprep.subr.bf16.mxu1 %v2570_v7  ;;  %v1968_v23 = vpack.c.bf16 %v1259_v6, %v1257_v22  ;;  %v1256_v11 = vld [vmem:[#allocation9 + $0x1e0] sm:$0xff] }
 0x31e   :  { %v893_v62 = vadd.f32 %v892_v17, %v2581_v12  ;;  %1151 = vmatprep.mubr.f32.mxu1 %v924_v55  ;;  %v1970_v24 = vpack.c.bf16 %v1258_v1, %v1256_v11  ;;  %v991_v7 = vld [vmem:[%s2847_s8] sm:$0x3] }
 0x31f   :  { %1152 = vmatmul.mubr.f32.gmra.mrb[60].mxu1 %v923_v13  ;;  %v925_v63 = vmax.f32 %v891_v32, 0.0  ;;  %1969 = vmatprep.subr.bf16.mxu0 %v1968_v23  ;;  %v2647_v12 = vrot.slane %v991_v7, %v2403_v28  ;;  %v2650_v3 = vrot.slane %v991_v7, %v2409_v30 }
 0x320   :  { %v926_v60 = vmax.f32 %v893_v62, 0.0  ;;  %2002 = vmatpush1.bf16.msra.mxu1 %v1966_v33  ;;  %1971 = vmatpush1.bf16.msra.mxu0 %v1970_v24 }
 0x321   :  { %1987 = vmatprep.subr.bf16.mxu1 %v1968_v23 }
 0x322   :  { %1157 = vmatprep.mubr.f32.mxu1 %v926_v60 }
 0x323   :  { %1158 = vmatmul.mubr.f32.gmra.mrb[62].mxu1 %v925_v63 }
 0x324   :  { %2003 = vmatpush1.bf16.msra.mxu1 %v1970_v24 }
 0x3ba   :  { %v1069_v25 = vpop.f32.mrb[32].mxu1 }
 0x3bb   :  { %v1070_v29 = vadd.f32 %v1069_v25, %v2647_v12  ;;  %v1071_v31 = vpop.f32.mrb[33].mxu1 }
 0x3bc   :  { %v1072_v8 = vadd.f32 %v1071_v31, %v2650_v3 }
 0x3bd   :  { %v1164_v35 = vmax.f32 %v1070_v29, 0.0 }
 0x3be   :  { %v1165_v34 = vmax.f32 %v1072_v8, 0.0  ;;  %v1075_v9 = vpop.f32.mrb[34].mxu1 }
 0x3bf   :  { %v1076_v37 = vadd.f32 %v1075_v9, %v2647_v12  ;;  %v1077_v38 = vpop.f32.mrb[35].mxu1 }
 0x3c0   :  { %v1078_v15 = vadd.f32 %v1077_v38, %v2650_v3  ;;  %1336 = vmatprep.mubr.f32.mxu0 %v1165_v34 }
 0x3c1   :  { %1337 = vmatmul.mubr.f32.vlgmr.msra.gmra.mrb[64].mxu0 %v1164_v35  ;;  %v1166_v39 = vmax.f32 %v1076_v37, 0.0 }
 0x3c2   :  { %v1167_v50 = vmax.f32 %v1078_v15, 0.0  ;;  %v1081_v16 = vpop.f32.mrb[36].mxu1 }
 0x3c3   :  { %v1082_v44 = vadd.f32 %v1081_v16, %v2647_v12  ;;  %v1083_v45 = vpop.f32.mrb[37].mxu1 }
 0x3c4   :  { %v1084_v19 = vadd.f32 %v1083_v45, %v2650_v3  ;;  %1342 = vmatprep.mubr.f32.mxu0 %v1167_v50 }
 0x3c5   :  { %1343 = vmatmul.mubr.f32.gmra.mrb[66].mxu0 %v1166_v39  ;;  %v1168_v51 = vmax.f32 %v1082_v44, 0.0 }
 0x3c6   :  { %v1169_v48 = vmax.f32 %v1084_v19, 0.0  ;;  %v1087_v20 = vpop.f32.mrb[38].mxu1 }
 0x3c7   :  { %v1088_v40 = vadd.f32 %v1087_v20, %v2647_v12  ;;  %v1089_v56 = vpop.f32.mrb[39].mxu1 }
 0x3c8   :  { %v1090_v26 = vadd.f32 %v1089_v56, %v2650_v3  ;;  %1348 = vmatprep.mubr.f32.mxu0 %v1169_v48 }
 0x3c9   :  { %1349 = vmatmul.mubr.f32.gmra.mrb[68].mxu0 %v1168_v51  ;;  %v1170_v57 = vmax.f32 %v1088_v40, 0.0 }
 0x3ca   :  { %v1171_v41 = vmax.f32 %v1090_v26, 0.0  ;;  %v1093_v27 = vpop.f32.mrb[40].mxu1 }
 0x3cb   :  { %v1094_v58 = vadd.f32 %v1093_v27, %v2647_v12  ;;  %v1095_v59 = vpop.f32.mrb[41].mxu1 }
 0x3cc   :  { %v1096_v36 = vadd.f32 %v1095_v59, %v2650_v3  ;;  %1354 = vmatprep.mubr.f32.mxu0 %v1171_v41 }
 0x3cd   :  { %1355 = vmatmul.mubr.f32.gmra.mrb[70].mxu0 %v1170_v57  ;;  %v1172_v0 = vmax.f32 %v1094_v58, 0.0 }
 0x3ce   :  { %v1173_v46 = vmax.f32 %v1096_v36, 0.0  ;;  %v1099_v49 = vpop.f32.mrb[42].mxu1 }
 0x3cf   :  { %v1100_v47 = vadd.f32 %v1099_v49, %v2647_v12  ;;  %v1101_v2 = vpop.f32.mrb[43].mxu1 }
 0x3d0   :  { %v1102_v42 = vadd.f32 %v1101_v2, %v2650_v3  ;;  %1360 = vmatprep.mubr.f32.mxu0 %v1173_v46 }
 0x3d1   :  { %1361 = vmatmul.mubr.f32.gmra.mrb[72].mxu0 %v1172_v0  ;;  %v1174_v5 = vmax.f32 %v1100_v47, 0.0 }
 0x3d2   :  { %v1175_v4 = vmax.f32 %v1102_v42, 0.0  ;;  %v1105_v43 = vpop.f32.mrb[44].mxu1 }
 0x3d3   :  { %v1106_v54 = vadd.f32 %v1105_v43, %v2647_v12  ;;  %v1107_v10 = vpop.f32.mrb[45].mxu1 }
 0x3d4   :  { %v1108_v52 = vadd.f32 %v1107_v10, %v2650_v3  ;;  %1366 = vmatprep.mubr.f32.mxu0 %v1175_v4  ;;  %v1525_v10 = vld [vmem:[#allocation2] sm:$0x1] }
 0x3d5   :  { %1367 = vmatmul.mubr.f32.gmra.mrb[74].mxu0 %v1174_v5  ;;  %v1176_v13 = vmax.f32 %v1106_v54, 0.0  ;;  %2004 = vpush %v1525_v10 }
 0x3d6   :  { %v1177_v55 = vmax.f32 %v1108_v52, 0.0  ;;  %v1111_v53 = vpop.f32.mrb[46].mxu1  ;;  %v1260_v52 = vld [vmem:[%s2849_s10] sm:$0x3] }
 0x3d7   :  { %v1112_v32 = vadd.f32 %v1111_v53, %v2647_v12  ;;  %v1113_v17 = vpop.f32.mrb[47].mxu1 }
 0x3d8   :  { %v1114_v62 = vadd.f32 %v1113_v17, %v2650_v3  ;;  %1372 = vmatprep.mubr.f32.mxu0 %v1177_v55  ;;  %v1433_v55 = vld [vmem:[%s2850_s11] sm:$0x3]  ;;  %s2139_s11 = smov [#allocation11]  }
 0x3d9   :  { %1373 = vmatmul.mubr.f32.gmra.mrb[76].mxu0 %v1176_v13  ;;  %v1178_v18 = vmax.f32 %v1112_v32, 0.0  ;;  %v2697_v53 = vrot.slane %v1433_v55, %v2403_v28  ;;  %v2700_v32 = vrot.slane %v1433_v55, %v2409_v30  ;;  %s1679_s17 = sshll.u32 %s2139_s11, 4  ;;  %s1680_s17 = int_to_ptr.vmem [resolvable:$true] %s1679_s17 }
 0x3da   :  { %v1179_v60 = vmax.f32 %v1114_v62, 0.0  ;;  %v1117_v63 = vpop.f32.mrb[48].mxu1  ;;  %s2102_s5 = scalar_lea.vmem %s1680_s17, 16  ;;  %s2106_s28 = scalar_lea.vmem %s1680_s17, 32 }
 0x3db   :  { %v1118_v61 = vadd.f32 %v1117_v63, %v2647_v12  ;;  %v1119_v33 = vpop.f32.mrb[49].mxu1  ;;  %p2103_p4 = scmp.ne.s32.totalorder %s1680_s17, %s2102_s5  ;;  %p2107_p5 = scmp.lt.s32.totalorder %s1680_s17, %s1680_s17 }
 0x3dc   :  { %v1120_v22 = vadd.f32 %v1119_v33, %v2650_v3  ;;  %1378 = vmatprep.mubr.f32.mxu0 %v1179_v60  ;;  %p2108_p6 = scmp.lt.s32.totalorder %s2106_s28, %s2102_s5 }
 0x3dd   :  { %1379 = vmatmul.mubr.f32.gmra.mrb[78].mxu0 %v1178_v18  ;;  %v1180_v11 = vmax.f32 %v1118_v61, 0.0 }
 0x3de   :  { %v1181_v6 = vmax.f32 %v1120_v22, 0.0  ;;  %v1123_v23 = vpop.f32.mrb[50].mxu1  ;;  %p2109_p7 = por %p2108_p6, %p2107_p5 }
 0x3df   :  { %v1124_v1 = vadd.f32 %v1123_v23, %v2647_v12  ;;  %v1125_v24 = vpop.f32.mrb[51].mxu1 }
 0x3e0   :  { %v1126_v7 = vadd.f32 %v1125_v24, %v2650_v3  ;;  %1384 = vmatprep.mubr.f32.mxu0 %v1181_v6  ;;  %p2110_p8 = pnand %p2109_p7, %p2103_p4 }
 0x3e1   :  { %1385 = vmatmul.mubr.f32.gmra.mrb[80].mxu0 %v1180_v11  ;;  %v1182_v31 = vmax.f32 %v1124_v1, 0.0 }
 0x3e2   :  { %v1183_v25 = vmax.f32 %v1126_v7, 0.0  ;;  %v1129_v29 = vpop.f32.mrb[52].mxu1 }
 0x3e3   :  { %v1130_v8 = vadd.f32 %v1129_v29, %v2647_v12  ;;  %v1131_v34 = vpop.f32.mrb[53].mxu1 }
 0x3e4   :  { %v1132_v9 = vadd.f32 %v1131_v34, %v2650_v3  ;;  %1390 = vmatprep.mubr.f32.mxu0 %v1183_v25 }
 0x3e5   :  { %1391 = vmatmul.mubr.f32.gmra.mrb[82].mxu0 %v1182_v31  ;;  %v1184_v38 = vmax.f32 %v1130_v8, 0.0 }
 0x3e6   :  { %v1185_v35 = vmax.f32 %v1132_v9, 0.0  ;;  %v1135_v37 = vpop.f32.mrb[54].mxu1 }
 0x3e7   :  { %v1136_v15 = vadd.f32 %v1135_v37, %v2647_v12  ;;  %v1137_v50 = vpop.f32.mrb[55].mxu1 }
 0x3e8   :  { %v1138_v16 = vadd.f32 %v1137_v50, %v2650_v3  ;;  %1396 = vmatprep.mubr.f32.mxu0 %v1185_v35 }
 0x3e9   :  { %1397 = vmatmul.mubr.f32.gmra.mrb[84].mxu0 %v1184_v38  ;;  %v1186_v45 = vmax.f32 %v1136_v15, 0.0 }
 0x3ea   :  { %v1187_v39 = vmax.f32 %v1138_v16, 0.0  ;;  %v1141_v44 = vpop.f32.mrb[56].mxu1 }
 0x3eb   :  { %v1142_v19 = vadd.f32 %v1141_v44, %v2647_v12  ;;  %v1143_v48 = vpop.f32.mrb[57].mxu1 }
 0x3ec   :  { %v1144_v20 = vadd.f32 %v1143_v48, %v2650_v3  ;;  %1402 = vmatprep.mubr.f32.mxu0 %v1187_v39 }
 0x3ed   :  { %1403 = vmatmul.mubr.f32.gmra.mrb[86].mxu0 %v1186_v45  ;;  %v1188_v56 = vmax.f32 %v1142_v19, 0.0 }
 0x3ee   :  { %v1189_v51 = vmax.f32 %v1144_v20, 0.0  ;;  %v1147_v40 = vpop.f32.mrb[58].mxu1 }
 0x3ef   :  { %v1148_v26 = vadd.f32 %v1147_v40, %v2647_v12  ;;  %v1149_v41 = vpop.f32.mrb[59].mxu1 }
 0x3f0   :  { %v1150_v27 = vadd.f32 %v1149_v41, %v2650_v3  ;;  %1408 = vmatprep.mubr.f32.mxu0 %v1189_v51 }
 0x3f1   :  { %1409 = vmatmul.mubr.f32.gmra.mrb[88].mxu0 %v1188_v56  ;;  %v1190_v59 = vmax.f32 %v1148_v26, 0.0 }
 0x3f2   :  { %v1191_v57 = vmax.f32 %v1150_v27, 0.0  ;;  %v1153_v58 = vpop.f32.mrb[60].mxu1 }
 0x3f3   :  { %v1154_v36 = vadd.f32 %v1153_v58, %v2647_v12  ;;  %v1155_v46 = vpop.f32.mrb[61].mxu1 }
 0x3f4   :  { %v1156_v49 = vadd.f32 %v1155_v46, %v2650_v3  ;;  %1414 = vmatprep.mubr.f32.mxu0 %v1191_v57 }
 0x3f5   :  { %1415 = vmatmul.mubr.f32.gmra.mrb[90].mxu0 %v1190_v59  ;;  %v1192_v2 = vmax.f32 %v1154_v36, 0.0 }
 0x3f6   :  { %v1193_v0 = vmax.f32 %v1156_v49, 0.0  ;;  %v1159_v47 = vpop.f32.mrb[62].mxu1 }
 0x3f7   :  { %v1160_v42 = vadd.f32 %v1159_v47, %v2647_v12  ;;  %v1161_v4 = vpop.f32.mrb[63].mxu1  ;;  %v2691_v12 = vrot.slane %v1260_v52, %v2403_v28 }
 0x3f8   :  { %v1162_v43 = vadd.f32 %v1161_v4, %v2650_v3  ;;  %1420 = vmatprep.mubr.f32.mxu0 %v1193_v0  ;;  %v2694_v3 = vrot.slane %v1260_v52, %v2409_v30 }
 0x3f9   :  { %1421 = vmatmul.mubr.f32.gmra.mrb[92].mxu0 %v1192_v2  ;;  %v1194_v54 = vmax.f32 %v1160_v42, 0.0 }
 0x3fa   :  { %v1195_v5 = vmax.f32 %v1162_v43, 0.0 }
 0x3fc   :  { %1426 = vmatprep.mubr.f32.mxu1 %v1195_v5 }
 0x3fd   :  { %1427 = vmatmul.mubr.f32.vlgmr.msra.gmra.mrb[64].mxu1 %v1194_v54 }
 0x406   :  { %s2005_s10 = spop %2004 }
 0x494   :  { %v1338_v13 = vpop.f32.mrb[64].mxu0 }
 0x495   :  { %v1339_v17 = vadd.f32 %v1338_v13, %v2691_v12  ;;  %v1340_v62 = vpop.f32.mrb[65].mxu0 }
 0x496   :  { %v1341_v60 = vadd.f32 %v1340_v62, %v2694_v3 }
 0x497   :  { %v1445_v63 = vmul.f32 %v2697_v53, %v1339_v17 }
 0x498   :  { %v1344_v18 = vpop.f32.mrb[66].mxu0  ;;  %v1446_v61 = vmul.f32 %v2700_v32, %v1341_v60 }
 0x499   :  { %v1345_v33 = vadd.f32 %v1344_v18, %v2691_v12  ;;  %v1346_v22 = vpop.f32.mrb[67].mxu0 }
 0x49a   :  { %v1347_v28 = vadd.f32 %v1346_v22, %v2694_v3  ;;  %v1477_v6 = vadd.f32 %v1446_v61, %v1445_v63 }
 0x49b   :  { %v1447_v23 = vmul.f32 %v2697_v53, %v1345_v33 }
 0x49c   :  { %v1448_v30 = vmul.f32 %v2700_v32, %v1347_v28  ;;  %v1350_v11 = vpop.f32.mrb[68].mxu0  ;;  %1478 = vadd.xlane.f32.xlu0 %v1477_v6 }
 0x49d   :  { %v1351_v1 = vadd.f32 %v1350_v11, %v2691_v12  ;;  %v1352_v24 = vpop.f32.mrb[69].mxu0 }
 0x49e   :  { %v1353_v7 = vadd.f32 %v1352_v24, %v2694_v3  ;;  %v1480_v25 = vadd.f32 %v1448_v30, %v1447_v23 }
 0x49f   :  { %v1449_v29 = vmul.f32 %v2697_v53, %v1351_v1 }
 0x4a0   :  { %v1356_v31 = vpop.f32.mrb[70].mxu0  ;;  %1481 = vadd.xlane.f32.xlu0 %v1480_v25  ;;  %v1450_v8 = vmul.f32 %v2700_v32, %v1353_v7 }
 0x4a1   :  { %v1357_v34 = vadd.f32 %v1356_v31, %v2691_v12  ;;  %v1358_v9 = vpop.f32.mrb[71].mxu0 }
 0x4a2   :  { %v1359_v35 = vadd.f32 %v1358_v9, %v2694_v3  ;;  %v1483_v37 = vadd.f32 %v1450_v8, %v1449_v29 }
 0x4a3   :  { %v1451_v38 = vmul.f32 %v2697_v53, %v1357_v34 }
 0x4a4   :  { %v1452_v15 = vmul.f32 %v2700_v32, %v1359_v35  ;;  %v1362_v50 = vpop.f32.mrb[72].mxu0  ;;  %1484 = vadd.xlane.f32.xlu1 %v1483_v37 }
 0x4a5   :  { %v1363_v16 = vadd.f32 %v1362_v50, %v2691_v12  ;;  %v1364_v39 = vpop.f32.mrb[73].mxu0 }
 0x4a6   :  { %v1365_v44 = vadd.f32 %v1364_v39, %v2694_v3  ;;  %v1486_v45 = vadd.f32 %v1452_v15, %v1451_v38 }
 0x4a7   :  { %v1453_v19 = vmul.f32 %v2697_v53, %v1363_v16 }
 0x4a8   :  { %v1454_v48 = vmul.f32 %v2700_v32, %v1365_v44  ;;  %v1368_v20 = vpop.f32.mrb[74].mxu0  ;;  %1487 = vadd.xlane.f32.xlu1 %v1486_v45 }
 0x4a9   :  { %v1369_v51 = vadd.f32 %v1368_v20, %v2691_v12  ;;  %v1370_v40 = vpop.f32.mrb[75].mxu0 }
 0x4aa   :  { %v1371_v56 = vadd.f32 %v1370_v40, %v2694_v3  ;;  %v1489_v26 = vadd.f32 %v1454_v48, %v1453_v19 }
 0x4ab   :  { %v1455_v41 = vmul.f32 %v2697_v53, %v1369_v51 }
 0x4ac   :  { %v1456_v27 = vmul.f32 %v2700_v32, %v1371_v56  ;;  %v1374_v57 = vpop.f32.mrb[76].mxu0  ;;  %1490 = vadd.xlane.f32.xlu0 %v1489_v26 }
 0x4ad   :  { %v1375_v58 = vadd.f32 %v1374_v57, %v2691_v12  ;;  %v1376_v59 = vpop.f32.mrb[77].mxu0 }
 0x4ae   :  { %v1377_v36 = vadd.f32 %v1376_v59, %v2694_v3  ;;  %v1492_v46 = vadd.f32 %v1456_v27, %v1455_v41 }
 0x4af   :  { %v1457_v49 = vmul.f32 %v2697_v53, %v1375_v58 }
 0x4b0   :  { %v1458_v0 = vmul.f32 %v2700_v32, %v1377_v36  ;;  %v1380_v47 = vpop.f32.mrb[78].mxu0  ;;  %1493 = vadd.xlane.f32.xlu1 %v1492_v46 }
 0x4b1   :  { %v1381_v2 = vadd.f32 %v1380_v47, %v2691_v12  ;;  %v1382_v42 = vpop.f32.mrb[79].mxu0 }
 0x4b2   :  { %v1383_v4 = vadd.f32 %v1382_v42, %v2694_v3  ;;  %v1495_v43 = vadd.f32 %v1458_v0, %v1457_v49 }
 0x4b3   :  { %v1459_v5 = vmul.f32 %v2697_v53, %v1381_v2 }
 0x4b4   :  { %v1460_v54 = vmul.f32 %v2700_v32, %v1383_v4  ;;  %v1386_v10 = vpop.f32.mrb[80].mxu0  ;;  %1496 = vadd.xlane.f32.xlu0 %v1495_v43 }
 0x4b5   :  { %v1387_v52 = vadd.f32 %v1386_v10, %v2691_v12  ;;  %v1388_v55 = vpop.f32.mrb[81].mxu0 }
 0x4b6   :  { %v1389_v13 = vadd.f32 %v1388_v55, %v2694_v3  ;;  %v1498_v17 = vadd.f32 %v1460_v54, %v1459_v5 }
 0x4b7   :  { %v1461_v62 = vmul.f32 %v2697_v53, %v1387_v52 }
 0x4b8   :  { %v1462_v60 = vmul.f32 %v2700_v32, %v1389_v13  ;;  %v1392_v63 = vpop.f32.mrb[82].mxu0  ;;  %1499 = vadd.xlane.f32.xlu1 %v1498_v17  ;;  %v2767_v13 = vand.u32 127, %v130_v14 }
 0x4b9   :  { %v1393_v18 = vadd.f32 %v1392_v63, %v2691_v12  ;;  %v1394_v61 = vpop.f32.mrb[83].mxu0  ;;  %v2773_v63 = vstv %s2005_s10 }
 0x4ba   :  { %v1395_v33 = vadd.f32 %v1394_v61, %v2694_v3  ;;  %v1501_v22 = vadd.f32 %v1462_v60, %v1461_v62  ;;  %v1573_v62 = vadd.s32 4294967280, %v2767_v13  ;;  %v1594_v14 = vadd.s32 4294967256, %v2767_v13 }
 0x4bb   :  { %v1463_v28 = vmul.f32 %v2697_v53, %v1393_v18  ;;  %v1564_v18 = vsub.s32 %v2767_v13, %v2400_v21 }
 0x4bc   :  { %v1464_v6 = vmul.f32 %v2700_v32, %v1395_v33  ;;  %v1398_v23 = vpop.f32.mrb[84].mxu0  ;;  %1502 = vadd.xlane.f32.xlu0 %v1501_v22  ;;  %v1576_v22 = vsub.s32 %v1573_v62, %v2400_v21 }
 0x4bd   :  { %v1399_v30 = vadd.f32 %v1398_v23, %v2691_v12  ;;  %v1400_v11 = vpop.f32.mrb[85].mxu0  ;;  %v1608_v23 = vadd.s32 4294967240, %v2767_v13 }
 0x4be   :  { %v1401_v1 = vadd.f32 %v1400_v11, %v2694_v3  ;;  %v1504_v24 = vadd.f32 %v1464_v6, %v1463_v28  ;;  %v1601_v28 = vadd.s32 4294967248, %v2767_v13 }
 0x4bf   :  { %v1465_v7 = vmul.f32 %v2697_v53, %v1399_v30 }
 0x4c0   :  { %v1466_v25 = vmul.f32 %v2700_v32, %v1401_v1  ;;  %v1404_v29 = vpop.f32.mrb[86].mxu0  ;;  %1505 = vadd.xlane.f32.xlu1 %v1504_v24  ;;  %v1615_v1 = vadd.s32 4294967232, %v2767_v13 }
 0x4c1   :  { %v1405_v31 = vadd.f32 %v1404_v29, %v2691_v12  ;;  %v1406_v8 = vpop.f32.mrb[87].mxu0  ;;  %v1622_v29 = vadd.s32 4294967224, %v2767_v13 }
 0x4c2   :  { %v1407_v34 = vadd.f32 %v1406_v8, %v2694_v3  ;;  %v1507_v9 = vadd.f32 %v1466_v25, %v1465_v7  ;;  %v1597_v25 = vsub.s32 %v1594_v14, %v2400_v21 }
 0x4c3   :  { %v1467_v35 = vmul.f32 %v2697_v53, %v1405_v31 }
 0x4c4   :  { %v1468_v37 = vmul.f32 %v2700_v32, %v1407_v34  ;;  %v1410_v38 = vpop.f32.mrb[88].mxu0  ;;  %1508 = vadd.xlane.f32.xlu0 %v1507_v9  ;;  %v1604_v9 = vsub.s32 %v1601_v28, %v2400_v21 }
 0x4c5   :  { %v1411_v15 = vadd.f32 %v1410_v38, %v2691_v12  ;;  %v1412_v50 = vpop.f32.mrb[89].mxu0  ;;  %v1629_v38 = vadd.s32 4294967216, %v2767_v13 }
 0x4c6   :  { %v1413_v16 = vadd.f32 %v1412_v50, %v2694_v3  ;;  %v1510_v39 = vadd.f32 %v1468_v37, %v1467_v35  ;;  %v1611_v37 = vsub.s32 %v1608_v23, %v2400_v21 }
 0x4c7   :  { %v1469_v44 = vmul.f32 %v2697_v53, %v1411_v15 }
 0x4c8   :  { %v1470_v45 = vmul.f32 %v2700_v32, %v1413_v16  ;;  %v1416_v19 = vpop.f32.mrb[90].mxu0  ;;  %1511 = vadd.xlane.f32.xlu1 %v1510_v39  ;;  %v1618_v16 = vsub.s32 %v1615_v1, %v2400_v21 }
 0x4c9   :  { %v1417_v48 = vadd.f32 %v1416_v19, %v2691_v12  ;;  %v1418_v20 = vpop.f32.mrb[91].mxu0 }
 0x4ca   :  { %v1419_v51 = vadd.f32 %v1418_v20, %v2694_v3  ;;  %v1513_v40 = vadd.f32 %v1470_v45, %v1469_v44  ;;  %v1636_v44 = vadd.s32 4294967208, %v2767_v13 }
 0x4cb   :  { %v1471_v56 = vmul.f32 %v2697_v53, %v1417_v48  ;;  %v1625_v48 = vsub.s32 %v1622_v29, %v2400_v21 }
 0x4cc   :  { %v1472_v26 = vmul.f32 %v2700_v32, %v1419_v51  ;;  %v1422_v41 = vpop.f32.mrb[92].mxu0  ;;  %1514 = vadd.xlane.f32.xlu0 %v1513_v40 }
 0x4cd   :  { %v1423_v27 = vadd.f32 %v1422_v41, %v2691_v12  ;;  %v1424_v57 = vpop.f32.mrb[93].mxu0 }
 0x4ce   :  { %v1425_v58 = vadd.f32 %v1424_v57, %v2694_v3  ;;  %v1516_v59 = vadd.f32 %v1472_v26, %v1471_v56  ;;  %v1643_v26 = vadd.s32 4294967200, %v2767_v13  ;;  %v1632_v57 = vsub.s32 %v1629_v38, %v2400_v21 }
 0x4cf   :  { %v1473_v36 = vmul.f32 %v2697_v53, %v1423_v27 }
 0x4d0   :  { %v1474_v46 = vmul.f32 %v2700_v32, %v1425_v58  ;;  %v1428_v49 = vpop.f32.mrb[64].mxu1  ;;  %1517 = vadd.xlane.f32.xlu1 %v1516_v59  ;;  %v1650_v58 = vadd.s32 4294967192, %v2767_v13 }
 0x4d1   :  { %v1429_v0 = vadd.f32 %v1428_v49, %v2691_v12  ;;  %v1430_v47 = vpop.f32.mrb[65].mxu1  ;;  %v1639_v49 = vsub.s32 %v1636_v44, %v2400_v21 }
 0x4d2   :  { %v1431_v2 = vadd.f32 %v1430_v47, %v2694_v3  ;;  %v1519_v42 = vadd.f32 %v1474_v46, %v1473_v36  ;;  %v1566_v3 = vadd.s32 4294967288, %v2767_v13 }
 0x4d3   :  { %v1475_v4 = vmul.f32 %v2697_v53, %v1429_v0  ;;  %v1580_v53 = vadd.s32 4294967272, %v2767_v13 }
 0x4d4   :  { %v1476_v43 = vmul.f32 %v2700_v32, %v1431_v2  ;;  %1520 = vadd.xlane.f32.xlu0 %v1519_v42  ;;  %v1587_v32 = vadd.s32 4294967264, %v2767_v13  ;;  %v1569_v33 = vsub.s32 %v1566_v3, %v2400_v21  ;;  %v1653_v3 = vsub.s32 %v1650_v58, %v2400_v21 }
 0x4d5   :  { %v1583_v6 = vsub.s32 %v1580_v53, %v2400_v21 }
 0x4d6   :  { %v1522_v5 = vadd.f32 %v1476_v43, %v1475_v4  ;;  %v1590_v11 = vsub.s32 %v1587_v32, %v2400_v21  ;;  %v1657_v43 = vadd.s32 4294967184, %v2767_v13 }
 0x4d8   :  { %1523 = vadd.xlane.f32.xlu1 %v1522_v5 }
 0x529   :  { %v1479_v54 = vpop.xlane.xlu0 %1478 }
 0x52a   :  { %v1528_v8 = vadd.f32 %v2773_v63, %v1479_v54 }
 0x52c   :  { %v1565_v51 = vrot.slane %v1528_v8, %v1564_v18 }
 0x52d   :  { %v1482_v52 = vpop.xlane.xlu0 %1481 }
 0x52e   :  { %v1529_v30 = vadd.f32 %v2773_v63, %v1482_v52  ;;  %v1646_v52 = vsub.s32 %v1643_v26, %v2400_v21 }
 0x530   :  { %v1570_v15 = vrot.slane %v1529_v30, %v1569_v33 }
 0x531   :  { %v1485_v10 = vpop.xlane.xlu1 %1484 }
 0x532   :  { %v1530_v7 = vadd.f32 %v2773_v63, %v1485_v10  ;;  %v1572_v59 = vsel %vm1571_vm2, %v1570_v15, %v1565_v51 }
 0x534   :  { %v1577_v45 = vrot.slane %v1530_v7, %v1576_v22 }
 0x535   :  { %v1488_v55 = vpop.xlane.xlu1 %1487 }
 0x536   :  { %v1531_v34 = vadd.f32 %v2773_v63, %v1488_v55  ;;  %v1579_v47 = vsel %vm1578_vm3, %v1577_v45, %v1572_v59 }
 0x538   :  { %v1584_v40 = vrot.slane %v1531_v34, %v1583_v6 }
 0x539   :  { %v1491_v17 = vpop.xlane.xlu0 %1490 }
 0x53a   :  { %v1532_v35 = vadd.f32 %v2773_v63, %v1491_v17  ;;  %v1586_v5 = vsel %vm1585_vm4, %v1584_v40, %v1579_v47 }
 0x53c   :  { %v1591_v41 = vrot.slane %v1532_v35, %v1590_v11 }
 0x53d   :  { %v1494_v12 = vpop.xlane.xlu1 %1493 }
 0x53e   :  { %v1533_v50 = vadd.f32 %v2773_v63, %v1494_v12  ;;  %v1593_v55 = vsel %vm1592_vm5, %v1591_v41, %v1586_v5 }
 0x540   :  { %v1598_v36 = vrot.slane %v1533_v50, %v1597_v25 }
 0x541   :  { %v1497_v60 = vpop.xlane.xlu0 %1496 }
 0x542   :  { %v1534_v19 = vadd.f32 %v2773_v63, %v1497_v60  ;;  %v1600_v62 = vsel %vm1599_vm6, %v1598_v36, %v1593_v55  ;;  %v1664_v60 = vadd.s32 4294967176, %v2767_v13 }
 0x544   :  { %v1605_v2 = vrot.slane %v1534_v19, %v1604_v9  ;;  %v1667_v1 = vsub.s32 %v1664_v60, %v2400_v21 }
 0x545   :  { %v1500_v61 = vpop.xlane.xlu1 %1499 }
 0x546   :  { %v1535_v56 = vadd.f32 %v2773_v63, %v1500_v61  ;;  %v1607_v18 = vsel %vm1606_vm7, %v1605_v2, %v1600_v62  ;;  %v1660_v61 = vsub.s32 %v1657_v43, %v2400_v21 }
 0x548   :  { %v1612_v54 = vrot.slane %v1535_v56, %v1611_v37 }
 0x549   :  { %v1503_v24 = vpop.xlane.xlu0 %1502 }
 0x54a   :  { %v1536_v27 = vadd.f32 %v2773_v63, %v1503_v24  ;;  %v1614_v22 = vsel %vm1613_vm8, %v1612_v54, %v1607_v18 }
 0x54c   :  { %v1619_v17 = vrot.slane %v1536_v27, %v1618_v16 }
 0x54d   :  { %v1506_v31 = vpop.xlane.xlu1 %1505 }
 0x54e   :  { %v1537_v46 = vadd.f32 %v2773_v63, %v1506_v31  ;;  %v1621_v23 = vsel %vm1620_vm9, %v1619_v17, %v1614_v22 }
 0x550   :  { %v1626_v53 = vrot.slane %v1537_v46, %v1625_v48 }
 0x551   :  { %v1509_v39 = vpop.xlane.xlu0 %1508 }
 0x552   :  { %v1538_v42 = vadd.f32 %v2773_v63, %v1509_v39  ;;  %v1628_v11 = vsel %vm1627_vm10, %v1626_v53, %v1621_v23 }
 0x554   :  { %v1633_v14 = vrot.slane %v1538_v42, %v1632_v57 }
 0x555   :  { %v1512_v20 = vpop.xlane.xlu1 %1511 }
 0x556   :  { %v1539_v10 = vadd.f32 %v2773_v63, %v1512_v20  ;;  %v1635_v24 = vsel %vm1634_vm11, %v1633_v14, %v1628_v11 }
 0x558   :  { %v1640_v28 = vrot.slane %v1539_v10, %v1639_v49 }
 0x559   :  { %v1515_v0 = vpop.xlane.xlu0 %1514 }
 0x55a   :  { %v1540_v12 = vadd.f32 %v2773_v63, %v1515_v0  ;;  %v1642_v29 = vsel %vm1641_vm12, %v1640_v28, %v1635_v24 }
 0x55c   :  { %v1647_v30 = vrot.slane %v1540_v12, %v1646_v52 }
 0x55d   :  { %v1518_v4 = vpop.xlane.xlu1 %1517 }
 0x55e   :  { %v1541_v32 = vadd.f32 %v2773_v63, %v1518_v4  ;;  %v1649_v8 = vsel %vm1648_vm13, %v1647_v30, %v1642_v29 }
 0x560   :  { %v1654_v13 = vrot.slane %v1541_v32, %v1653_v3 }
 0x561   :  { %v1521_v33 = vpop.xlane.xlu0 %1520 }
 0x562   :  { %v1542_v6 = vadd.f32 %v2773_v63, %v1521_v33  ;;  %v1656_v34 = vsel %vm1655_vm14, %v1654_v13, %v1649_v8 }
 0x564   :  { %v1661_v7 = vrot.slane %v1542_v6, %v1660_v61 }
 0x565   :  { %v1524_v25 = vpop.xlane.xlu1 %1523 }
 0x566   :  { %v1543_v31 = vadd.f32 %v2773_v63, %v1524_v25  ;;  %v1663_v35 = vsel %vm1662_vm15, %v1661_v7, %v1656_v34 }
 0x568   :  { %v1668_v9 = vrot.slane %v1543_v31, %v1667_v1 }
 0x56a   :  { %v1670_v37 = vsel %vm1669_vm0, %v1668_v9, %v1663_v35 }
 0x56b   :  { %1672 = vst [vmem:[#allocation11] sm:$0x1] %v1670_v37 }
 0x56c   :  { %2113 = shalt.err (!%p2110_p8)
}
 0x56d   :  { %s2114_s23 = scalar_lea.hbm %s2852_s13, 16 }
 0x56e   :  { %p2115_p9 = scmp.ne.s32.totalorder %s2852_s13, %s2114_s23  ;;  %p2118_p10 = scmp.lt.u32.totalorder %s2114_s23, %s2852_s13 }
 0x570   :  { %p2120_p11 = pnand %p2118_p10, %p2115_p9 }
 0x572   :  { %2123 = shalt.err (!%p2120_p11)
}
 0x573   :  { %1682 = dma.vmem_to_hbm [thread:$0]  %s1680_s17, 16, %s2852_s13, [#allocation5]  }
 0x574   :  { %2130 = dma.done.wait [#allocation5], 16  }
 0x575   :  { %2131 = vsyncadd [#allocation5], 4294967280 }
 0x576   :  { %1686 = vsyncpa [#allocation4], 1 }
 0x577   :  { %1687 = vsyncpa [#allocation7], 1 }
 0x578   :  { %1688 = vsyncpa [#allocation10], 1 }
 0x579   :  { %1689 = vsyncpa [#allocation5], 1 }

</bundles_post_ra>
